<compile_context>
chip_gen: v6e
topology: v6e:2x2x1
jax: 0.10.0
libtpu: 0.0.40
codegen_flags: <defaults>
</compile_context>

<pallas_src>
import functools

import jax
import jax.numpy as jnp
from jax.experimental import pallas as pl
from jax.experimental.pallas import tpu as pltpu


def _ggc_kernel(n_fe, d_pad, edge_tile,
                src_ref, dst_ref,                       # SMEM scalar prefetch (E_pad,)
                feat_ref, efeat_ref, basis_ref,
                wih_ref, whh_ref, bih_ref, bhh_ref,
                out_ref,                                # resident: carried hidden state
                hsrc_scr, msg_scr, rst_scr):
    """grid = (n_steps, n_edge_tiles); h lives in out_ref, rst in VMEM scratch."""
    step = pl.program_id(0)
    etile = pl.program_id(1)
    last_etile = pl.num_programs(1) - 1
    base = etile * edge_tile

    # Initialize the carried hidden state from the input node features once.
    @pl.when((step == 0) & (etile == 0))
    def _init_h():
        out_ref[...] = feat_ref[...]

    # Zero the scatter-sum accumulator at the start of every recurrent step.
    @pl.when(etile == 0)
    def _zero_acc():
        rst_scr[...] = jnp.zeros_like(rst_scr)

    # ---- Gather (index-based): hsrc[i] = h[src[base + i]] -------------------
    @pl.loop(0, edge_tile)
    def _gather(i):
        s = src_ref[base + i]
        hsrc_scr[pl.ds(i, 1), :] = out_ref[pl.ds(s, 1), :]

    # ---- Factorized per-edge message (single MXU matmul, (TE, Dp) result) ---
    #   msg[e] = h_src[e] @ (sum_f efeat_aug[e,f] * W_f)
    #          = concat_f(efeat_aug[e,f] * h_src[e]) @ vstack_f(W_f)
    # where W_{FE} is the edge_nn bias matrix and efeat_aug[:, FE] == 1.
    h_src = hsrc_scr[...]                                        # (TE, Dp) f32
    ef = efeat_ref[...]                                          # (TE, n_fe)
    h_aug = jnp.concatenate(
        [ef[:, f:f + 1] * h_src for f in range(n_fe)], axis=-1)  # (TE, n_fe*Dp)
    msg_scr[...] = jnp.dot(h_aug, basis_ref[...],
                           preferred_element_type=jnp.float32)   # (TE, Dp)

    # ---- Scatter-sum (index-based): rst[dst[e]] += msg[e] -------------------
    # Padded edges have all-zero augmented edge features -> msg == 0 -> inert.
    @pl.loop(0, edge_tile)
    def _scatter(i):
        d = dst_ref[base + i]
        rst_scr[pl.ds(d, 1), :] = (rst_scr[pl.ds(d, 1), :]
                                   + msg_scr[pl.ds(i, 1), :])

    # ---- GRUCell(rst, h), PyTorch order r, z, n: once per step --------------
    @pl.when(etile == last_etile)
    def _gru():
        h = out_ref[...]
        rst = rst_scr[...]
        gi = jnp.dot(rst, wih_ref[...],
                     preferred_element_type=jnp.float32) + bih_ref[...]
        gh = jnp.dot(h, whh_ref[...],
                     preferred_element_type=jnp.float32) + bhh_ref[...]
        r = jax.nn.sigmoid(gi[:, 0:d_pad] + gh[:, 0:d_pad])
        z = jax.nn.sigmoid(gi[:, d_pad:2 * d_pad] + gh[:, d_pad:2 * d_pad])
        n = jnp.tanh(gi[:, 2 * d_pad:] + r * gh[:, 2 * d_pad:])
        out_ref[...] = (1.0 - z) * n + z * h
        # TODO(synk): nn.Dropout(0.3) between steps omitted (eval / inference mode).


def gated_graph_conv(feat, efeat, src, dst, edge_w, edge_b,
                     wih, whh, bih, bhh, *, n_steps, edge_tile=256):
    """Wrapper: layout plumbing (padding, factoring, index prep) + pallas_call.

    feat (N, D) f32; efeat (E, FE); src/dst (E,) int; edge_w (FE, D*D),
    edge_b (D*D,) = linear edge_nn params; wih/whh (3D, D), bih/bhh (3D,) =
    PyTorch GRUCell params.  edge_tile is a per-generation knob (256-512 works
    everywhere now that VMEM no longer scales with N x edge_tile).
    """
    N, D = feat.shape
    E, FE = efeat.shape
    assert wih.shape == (3 * D, D) and whh.shape == (3 * D, D)

    f32 = jnp.float32
    Dp = ((D + 127) // 128) * 128                 # lane-pad the feature dim
    Np = ((N + 7) // 8) * 8                       # sublane-pad the node dim
    n_fe = FE + 1                                 # extra slot carries edge_nn bias
    E_pad = ((E + edge_tile - 1) // edge_tile) * edge_tile
    n_etiles = E_pad // edge_tile

    # Node features, zero-padded (padded node rows / feature cols stay inert).
    feat_p = jnp.zeros((Np, Dp), f32).at[:N, :D].set(feat.astype(f32))

    # src/dst as int32 scalar-prefetch arrays. Padded edges point at node 0 but
    # have all-zero augmented edge features, so they contribute nothing.
    src_p = jnp.zeros((E_pad,), jnp.int32).at[:E].set(src.astype(jnp.int32))
    dst_p = jnp.zeros((E_pad,), jnp.int32).at[:E].set(dst.astype(jnp.int32))

    # Augmented edge features: constant-1 column multiplies the bias matrix.
    efeat_p = jnp.zeros((E_pad, n_fe), f32)
    efeat_p = efeat_p.at[:E, :FE].set(efeat.astype(f32))
    efeat_p = efeat_p.at[:E, FE].set(1.0)

    # Factorized edge weights stacked along ROWS:
    #   basis_rows[f*Dp + d_in, d_out] = W_f[d_in, d_out]; slot FE = bias matrix.
    basis = jnp.zeros((n_fe, Dp, Dp), f32)
    basis = basis.at[:FE, :D, :D].set(edge_w.reshape(FE, D, D).astype(f32))
    basis = basis.at[FE, :D, :D].set(edge_b.reshape(D, D).astype(f32))
    basis_rows = basis.reshape(n_fe * Dp, Dp)

    # GRU weights transposed; each gate padded to its own 128-lane-aligned slab.
    def pad_w(w):
        wt = w.T.astype(f32)                      # (D, 3D)
        out = jnp.zeros((Dp, 3 * Dp), f32)
        for g in range(3):
            out = out.at[:D, g * Dp:g * Dp + D].set(wt[:, g * D:(g + 1) * D])
        return out

    def pad_b(b):
        out = jnp.zeros((1, 3 * Dp), f32)
        for g in range(3):
            out = out.at[0, g * Dp:g * Dp + D].set(b[g * D:(g + 1) * D].astype(f32))
        return out

    wih_p, whh_p = pad_w(wih), pad_w(whh)
    bih_p, bhh_p = pad_b(bih), pad_b(bhh)

    kernel = functools.partial(_ggc_kernel, n_fe, Dp, edge_tile)
    resident = lambda t, e, s_ref, d_ref: (0, 0)

    grid_spec = pltpu.PrefetchScalarGridSpec(
        num_scalar_prefetch=2,                                   # src, dst -> SMEM
        grid=(n_steps, n_etiles),
        in_specs=[
            pl.BlockSpec((Np, Dp), resident),                    # feat (resident)
            pl.BlockSpec((edge_tile, n_fe),
                         lambda t, e, s_ref, d_ref: (e, 0)),     # efeat (edge-tiled)
            pl.BlockSpec((n_fe * Dp, Dp), resident),             # stacked basis matrices
            pl.BlockSpec((Dp, 3 * Dp), resident),                # GRU W_ih^T (padded)
            pl.BlockSpec((Dp, 3 * Dp), resident),                # GRU W_hh^T (padded)
            pl.BlockSpec((1, 3 * Dp), resident),                 # GRU b_ih (padded)
            pl.BlockSpec((1, 3 * Dp), resident),                 # GRU b_hh (padded)
        ],
        out_specs=pl.BlockSpec((Np, Dp), resident),              # carried hidden state
        scratch_shapes=[pltpu.VMEM((edge_tile, Dp), f32),        # gathered h_src rows
                        pltpu.VMEM((edge_tile, Dp), f32),        # per-edge messages
                        pltpu.VMEM((Np, Dp), f32)],              # scatter-sum accumulator
    )

    flops = n_steps * (
        2 * E_pad * n_fe * Dp * Dp         # factored message matmul (MXU)
        + n_fe * E_pad * Dp                # efeat combine (VPU)
        + 2 * 2 * Np * Dp * 3 * Dp         # GRU matmuls
        + 12 * Np * Dp)                    # GRU elementwise
    transcendentals = n_steps * 3 * Np * Dp
    bytes_accessed = (
        4 * (feat_p.size + basis_rows.size + wih_p.size + whh_p.size
             + bih_p.size + bhh_p.size + Np * Dp)                # one-shot residents + out
        + 4 * (src_p.size + dst_p.size)                          # SMEM index arrays
        + n_steps * 4 * efeat_p.size)                            # efeat re-streamed / step

    out_p = pl.pallas_call(
        kernel,
        out_shape=jax.ShapeDtypeStruct((Np, Dp), f32),
        grid_spec=grid_spec,
        compiler_params=pltpu.CompilerParams(
            # Both axes are sequential: steps are a recurrence, edge tiles are a
            # reduction into the scratch accumulator.
            dimension_semantics=("arbitrary", "arbitrary"),
            # Footprint no longer scales with N x edge_tile: 48 MiB is safe on
            # v5e/v6e (128 MiB VMEM) and v7x (64 MiB/TC) alike.
            vmem_limit_bytes=48 * 1024 * 1024,
        ),
        cost_estimate=pl.CostEstimate(flops=flops,
                                      transcendentals=transcendentals,
                                      bytes_accessed=bytes_accessed),
    )(src_p, dst_p, feat_p, efeat_p, basis_rows, wih_p, whh_p, bih_p, bhh_p)

    return out_p[:N, :D]


if __name__ == "__main__":
    # Small deterministic problem: N nodes, D=in_feats=out_feats, E edges,
    # FE edge-feature dim, n_steps recurrent steps (edge_tile chosen so the
    # edge axis spans two grid tiles and exercises the accumulator path).
    N, D, E, FE, n_steps = 16, 8, 200, 4, 3

    key = jax.random.PRNGKey(0)
    ks = jax.random.split(key, 10)

    feat = jax.random.normal(ks[0], (N, D), jnp.float32)
    efeat = jax.random.normal(ks[1], (E, FE), jnp.float32)
    src = jax.random.randint(ks[2], (E,), 0, N)
    dst = jax.random.randint(ks[3], (E,), 0, N)

    # edge_func: a linear layer efeat -> (in_feats*out_feats); its parameters are
    # passed to the kernel in factored form (basis matrices + per-edge coefficients).
    edge_w = jax.random.normal(ks[4], (FE, D * D), jnp.float32) * 0.1
    edge_b = jax.random.normal(ks[5], (D * D,), jnp.float32) * 0.1

    # GRUCell parameters (PyTorch layout: weight_ih (3H, D_in), weight_hh (3H, H)).
    scale = 1.0 / jnp.sqrt(jnp.float32(D))
    wih = jax.random.uniform(ks[6], (3 * D, D), jnp.float32, -scale, scale)
    whh = jax.random.uniform(ks[7], (3 * D, D), jnp.float32, -scale, scale)
    bih = jax.random.uniform(ks[8], (3 * D,), jnp.float32, -scale, scale)
    bhh = jax.random.uniform(ks[9], (3 * D,), jnp.float32, -scale, scale)

    out = gated_graph_conv(feat, efeat, src, dst, edge_w, edge_b,
                           wih, whh, bih, bhh, n_steps=n_steps, edge_tile=128)
    out = jax.block_until_ready(out)

    # Pure-JAX reference using the original (unfactored) per-edge weights.
    w_edges = (efeat @ edge_w + edge_b).reshape(E, D, D)
    h = feat
    for _ in range(n_steps):
        h_src = h[src]                                            # (E, D) gather
        msg = jnp.einsum('ed,edf->ef', h_src, w_edges)            # (E, D)
        rst = jnp.zeros((N, D), jnp.float32).at[dst].add(msg)     # scatter-sum
        gi = rst @ wih.T + bih
        gh = h @ whh.T + bhh
        r = jax.nn.sigmoid(gi[:, :D] + gh[:, :D])
        z = jax.nn.sigmoid(gi[:, D:2 * D] + gh[:, D:2 * D])
        n = jnp.tanh(gi[:, 2 * D:] + r * gh[:, 2 * D:])
        h = (1.0 - z) * n + z * h

    assert out.shape == (N, D)
    assert jnp.allclose(out, h, atol=1e-3, rtol=1e-3), "kernel/reference mismatch"
    print("KERNEL_OK")
</pallas_src>

<mosaic_0001>
module attributes {stable_mosaic.version = 11 : i64} {
  func.func @_ggc_kernel(%arg0: i32, %arg1: i32, %arg2: memref<256xi32, #tpu.memory_space<smem>>, %arg3: memref<256xi32, #tpu.memory_space<smem>>, %arg4: memref<16x128xf32, #tpu.memory_space<vmem>>, %arg5: memref<128x5xf32, #tpu.memory_space<vmem>>, %arg6: memref<640x128xf32, #tpu.memory_space<vmem>>, %arg7: memref<128x384xf32, #tpu.memory_space<vmem>>, %arg8: memref<128x384xf32, #tpu.memory_space<vmem>>, %arg9: memref<1x384xf32, #tpu.memory_space<vmem>>, %arg10: memref<1x384xf32, #tpu.memory_space<vmem>>, %arg11: memref<16x128xf32, #tpu.memory_space<vmem>>, %arg12: memref<128x128xf32, #tpu.memory_space<vmem>>, %arg13: memref<128x128xf32, #tpu.memory_space<vmem>>, %arg14: memref<16x128xf32, #tpu.memory_space<vmem>>) attributes {dimension_semantics = [#tpu.dimension_semantics<arbitrary>, #tpu.dimension_semantics<arbitrary>], iteration_bounds = array<i64: 3, 2>, scalar_prefetch = 2 : i64, scratch_operands = 3 : i64, tpu.core_type = #tpu.core_type<tc>, window_params = [{pipeline_mode = #tpu.pipeline_mode<synchronous>, transform_indices = @transform_0, window_bounds = array<i64: 16, 128>}, {transform_indices = @transform_1, window_bounds = array<i64: 128, 5>}, {pipeline_mode = #tpu.pipeline_mode<synchronous>, transform_indices = @transform_2, window_bounds = array<i64: 640, 128>}, {pipeline_mode = #tpu.pipeline_mode<synchronous>, transform_indices = @transform_3, window_bounds = array<i64: 128, 384>}, {pipeline_mode = #tpu.pipeline_mode<synchronous>, transform_indices = @transform_4, window_bounds = array<i64: 128, 384>}, {pipeline_mode = #tpu.pipeline_mode<synchronous>, transform_indices = @transform_5, window_bounds = array<i64: 1, 384>}, {pipeline_mode = #tpu.pipeline_mode<synchronous>, transform_indices = @transform_6, window_bounds = array<i64: 1, 384>}, {pipeline_mode = #tpu.pipeline_mode<synchronous>, transform_indices = @transform_7, window_bounds = array<i64: 16, 128>}]} {
    %c128_i32 = arith.constant 128 : i32
    %0 = arith.muli %arg1, %c128_i32 : i32
    %c0_i32 = arith.constant 0 : i32
    %1 = arith.cmpi eq, %arg0, %c0_i32 : i32
    %c0_i32_0 = arith.constant 0 : i32
    %2 = arith.cmpi eq, %arg1, %c0_i32_0 : i32
    %3 = arith.andi %1, %2 : i1
    %4 = arith.extui %3 : i1 to i32
    %c0_i32_1 = arith.constant 0 : i32
    %5 = arith.cmpi ne, %4, %c0_i32_1 : i32
    scf.if %5 {
      %c0_20 = arith.constant 0 : index
      %c0_21 = arith.constant 0 : index
      %35 = vector.load %arg4[%c0_20, %c0_21] : memref<16x128xf32, #tpu.memory_space<vmem>>, vector<16x128xf32>
      %c0_22 = arith.constant 0 : index
      %c0_23 = arith.constant 0 : index
      %36 = vector.load %arg11[%c0_22, %c0_23] : memref<16x128xf32, #tpu.memory_space<vmem>>, vector<16x128xf32>
      tpu.vector_store %arg11[%c0_22, %c0_23], %35 {strides = array<i32>} : memref<16x128xf32, #tpu.memory_space<vmem>>, vector<16x128xf32>,
    } else {
    }
    %c0_i32_2 = arith.constant 0 : i32
    %6 = arith.cmpi eq, %arg1, %c0_i32_2 : i32
    %7 = arith.extui %6 : i1 to i32
    %c0_i32_3 = arith.constant 0 : i32
    %8 = arith.cmpi ne, %7, %c0_i32_3 : i32
    scf.if %8 {
      %cst_20 = arith.constant 0.000000e+00 : f32
      %35 = vector.broadcast %cst_20 : f32 to vector<16x128xf32>
      %c0_21 = arith.constant 0 : index
      %c0_22 = arith.constant 0 : index
      %36 = vector.load %arg14[%c0_21, %c0_22] : memref<16x128xf32, #tpu.memory_space<vmem>>, vector<16x128xf32>
      tpu.vector_store %arg14[%c0_21, %c0_22], %35 {strides = array<i32>} : memref<16x128xf32, #tpu.memory_space<vmem>>, vector<16x128xf32>,
    } else {
    }
    %c0_i32_4 = arith.constant 0 : i32
    %c128_i32_5 = arith.constant 128 : i32
    %9 = arith.addi %c0_i32_4, %c128_i32_5 : i32
    %c1_i32 = arith.constant 1 : i32
    scf.for %arg15 = %c0_i32_4 to %9 step %c1_i32  : i32 {
      %c1_i32_20 = arith.constant 1 : i32
      %35 = arith.muli %arg15, %c1_i32_20 : i32
      %c0_i32_21 = arith.constant 0 : i32
      %36 = arith.addi %c0_i32_21, %35 : i32
      %37 = arith.addi %0, %36 : i32
      %38 = arith.index_cast %37 : i32 to index
      %39 = memref.load %arg2[%38] : memref<256xi32, #tpu.memory_space<smem>>
      %40 = arith.index_cast %39 : i32 to index
      %c0_22 = arith.constant 0 : index
      %41 = vector.load %arg11[%40, %c0_22] : memref<16x128xf32, #tpu.memory_space<vmem>>, vector<1x128xf32>
      %42 = arith.index_cast %36 : i32 to index
      %c0_23 = arith.constant 0 : index
      %43 = vector.load %arg12[%42, %c0_23] : memref<128x128xf32, #tpu.memory_space<vmem>>, vector<1x128xf32>
      tpu.vector_store %arg12[%42, %c0_23], %41 {strides = array<i32>} : memref<128x128xf32, #tpu.memory_space<vmem>>, vector<1x128xf32>,
    }
    %c128_i32_6 = arith.constant 128 : i32
    %c0 = arith.constant 0 : index
    %c0_7 = arith.constant 0 : index
    %10 = vector.load %arg12[%c0, %c0_7] : memref<128x128xf32, #tpu.memory_space<vmem>>, vector<128x128xf32>
    %c0_8 = arith.constant 0 : index
    %c0_9 = arith.constant 0 : index
    %11 = vector.load %arg5[%c0_8, %c0_9] : memref<128x5xf32, #tpu.memory_space<vmem>>, vector<128x5xf32>
    %12 = vector.extract_strided_slice %11 {offsets = [0, 0], sizes = [128, 1], strides = [1, 1]} : vector<128x5xf32> to vector<128x1xf32>
    %13 = vector.broadcast %12 : vector<128x1xf32> to vector<128x128xf32>
    %14 = arith.mulf %13, %10 : vector<128x128xf32>
    %15 = vector.extract_strided_slice %11 {offsets = [0, 1], sizes = [128, 1], strides = [1, 1]} : vector<128x5xf32> to vector<128x1xf32>
    %16 = vector.broadcast %15 : vector<128x1xf32> to vector<128x128xf32>
    %17 = arith.mulf %16, %10 : vector<128x128xf32>
    %18 = vector.extract_strided_slice %11 {offsets = [0, 2], sizes = [128, 1], strides = [1, 1]} : vector<128x5xf32> to vector<128x1xf32>
    %19 = vector.broadcast %18 : vector<128x1xf32> to vector<128x128xf32>
    %20 = arith.mulf %19, %10 : vector<128x128xf32>
    %21 = vector.extract_strided_slice %11 {offsets = [0, 3], sizes = [128, 1], strides = [1, 1]} : vector<128x5xf32> to vector<128x1xf32>
    %22 = vector.broadcast %21 : vector<128x1xf32> to vector<128x128xf32>
    %23 = arith.mulf %22, %10 : vector<128x128xf32>
    %24 = vector.extract_strided_slice %11 {offsets = [0, 4], sizes = [128, 1], strides = [1, 1]} : vector<128x5xf32> to vector<128x1xf32>
    %25 = vector.broadcast %24 : vector<128x1xf32> to vector<128x128xf32>
    %26 = arith.mulf %25, %10 : vector<128x128xf32>
    %27 = tpu.concatenate %14, %17, %20, %23, %26 in 1 : vector<128x128xf32>, vector<128x128xf32>, vector<128x128xf32>, vector<128x128xf32>, vector<128x128xf32> -> vector<128x640xf32>
    %c0_10 = arith.constant 0 : index
    %c0_11 = arith.constant 0 : index
    %28 = vector.load %arg6[%c0_10, %c0_11] : memref<640x128xf32, #tpu.memory_space<vmem>>, vector<640x128xf32>
    %cst = arith.constant dense<0.000000e+00> : vector<128x128xf32>
    %29 = tpu.matmul %27, %28, %cst {dimension_numbers = #tpu.dot_dimension_numbers<[1], [0], [0], [1], [0, 0, 1, 1], [], []>} : vector<128x640xf32>, vector<640x128xf32>, vector<128x128xf32> -> vector<128x128xf32>
    %c0_12 = arith.constant 0 : index
    %c0_13 = arith.constant 0 : index
    %30 = vector.load %arg13[%c0_12, %c0_13] : memref<128x128xf32, #tpu.memory_space<vmem>>, vector<128x128xf32>
    tpu.vector_store %arg13[%c0_12, %c0_13], %29 {strides = array<i32>} : memref<128x128xf32, #tpu.memory_space<vmem>>, vector<128x128xf32>,
    %c0_i32_14 = arith.constant 0 : i32
    %c128_i32_15 = arith.constant 128 : i32
    %31 = arith.addi %c0_i32_14, %c128_i32_15 : i32
    %c1_i32_16 = arith.constant 1 : i32
    scf.for %arg15 = %c0_i32_14 to %31 step %c1_i32_16  : i32 {
      %c1_i32_20 = arith.constant 1 : i32
      %35 = arith.muli %arg15, %c1_i32_20 : i32
      %c0_i32_21 = arith.constant 0 : i32
      %36 = arith.addi %c0_i32_21, %35 : i32
      %37 = arith.addi %0, %36 : i32
      %38 = arith.index_cast %37 : i32 to index
      %39 = memref.load %arg3[%38] : memref<256xi32, #tpu.memory_space<smem>>
      %40 = arith.index_cast %39 : i32 to index
      %c0_22 = arith.constant 0 : index
      %41 = vector.load %arg14[%40, %c0_22] : memref<16x128xf32, #tpu.memory_space<vmem>>, vector<1x128xf32>
      %42 = arith.index_cast %36 : i32 to index
      %c0_23 = arith.constant 0 : index
      %43 = vector.load %arg13[%42, %c0_23] : memref<128x128xf32, #tpu.memory_space<vmem>>, vector<1x128xf32>
      %44 = arith.addf %41, %43 : vector<1x128xf32>
      %45 = arith.index_cast %39 : i32 to index
      %c0_24 = arith.constant 0 : index
      %46 = vector.load %arg14[%45, %c0_24] : memref<16x128xf32, #tpu.memory_space<vmem>>, vector<1x128xf32>
      tpu.vector_store %arg14[%45, %c0_24], %44 {strides = array<i32>} : memref<16x128xf32, #tpu.memory_space<vmem>>, vector<1x128xf32>,
    }
    %c128_i32_17 = arith.constant 128 : i32
    %c1_i32_18 = arith.constant 1 : i32
    %32 = arith.cmpi eq, %arg1, %c1_i32_18 : i32
    %33 = arith.extui %32 : i1 to i32
    %c0_i32_19 = arith.constant 0 : i32
    %34 = arith.cmpi ne, %33, %c0_i32_19 : i32
    scf.if %34 {
      %c0_20 = arith.constant 0 : index
      %c0_21 = arith.constant 0 : index
      %35 = vector.load %arg11[%c0_20, %c0_21] : memref<16x128xf32, #tpu.memory_space<vmem>>, vector<16x128xf32>
      %c0_22 = arith.constant 0 : index
      %c0_23 = arith.constant 0 : index
      %36 = vector.load %arg14[%c0_22, %c0_23] : memref<16x128xf32, #tpu.memory_space<vmem>>, vector<16x128xf32>
      %c0_24 = arith.constant 0 : index
      %c0_25 = arith.constant 0 : index
      %37 = vector.load %arg7[%c0_24, %c0_25] : memref<128x384xf32, #tpu.memory_space<vmem>>, vector<128x384xf32>
      %cst_26 = arith.constant dense<0.000000e+00> : vector<16x384xf32>
      %38 = tpu.matmul %36, %37, %cst_26 {dimension_numbers = #tpu.dot_dimension_numbers<[1], [0], [0], [1], [0, 0, 1, 1], [], []>} : vector<16x128xf32>, vector<128x384xf32>, vector<16x384xf32> -> vector<16x384xf32>
      %c0_27 = arith.constant 0 : index
      %c0_28 = arith.constant 0 : index
      %39 = vector.load %arg9[%c0_27, %c0_28] : memref<1x384xf32, #tpu.memory_space<vmem>>, vector<1x384xf32>
      %40 = vector.broadcast %39 : vector<1x384xf32> to vector<16x384xf32>
      %41 = arith.addf %38, %40 : vector<16x384xf32>
      %c0_29 = arith.constant 0 : index
      %c0_30 = arith.constant 0 : index
      %42 = vector.load %arg8[%c0_29, %c0_30] : memref<128x384xf32, #tpu.memory_space<vmem>>, vector<128x384xf32>
      %cst_31 = arith.constant dense<0.000000e+00> : vector<16x384xf32>
      %43 = tpu.matmul %35, %42, %cst_31 {dimension_numbers = #tpu.dot_dimension_numbers<[1], [0], [0], [1], [0, 0, 1, 1], [], []>} : vector<16x128xf32>, vector<128x384xf32>, vector<16x384xf32> -> vector<16x384xf32>
      %c0_32 = arith.constant 0 : index
      %c0_33 = arith.constant 0 : index
      %44 = vector.load %arg10[%c0_32, %c0_33] : memref<1x384xf32, #tpu.memory_space<vmem>>, vector<1x384xf32>
      %45 = vector.broadcast %44 : vector<1x384xf32> to vector<16x384xf32>
      %46 = arith.addf %43, %45 : vector<16x384xf32>
      %47 = vector.extract_strided_slice %41 {offsets = [0, 0], sizes = [16, 128], strides = [1, 1]} : vector<16x384xf32> to vector<16x128xf32>
      %48 = vector.extract_strided_slice %46 {offsets = [0, 0], sizes = [16, 128], strides = [1, 1]} : vector<16x384xf32> to vector<16x128xf32>
      %49 = arith.addf %47, %48 : vector<16x128xf32>
      %50 = arith.negf %49 : vector<16x128xf32>
      %51 = math.exp %50 : vector<16x128xf32>
      %cst_34 = arith.constant 1.000000e+00 : f32
      %52 = vector.broadcast %cst_34 : f32 to vector<16x128xf32>
      %53 = arith.addf %52, %51 : vector<16x128xf32>
      %54 = arith.divf %52, %53 : vector<16x128xf32>
      %55 = vector.extract_strided_slice %41 {offsets = [0, 128], sizes = [16, 128], strides = [1, 1]} : vector<16x384xf32> to vector<16x128xf32>
      %56 = vector.extract_strided_slice %46 {offsets = [0, 128], sizes = [16, 128], strides = [1, 1]} : vector<16x384xf32> to vector<16x128xf32>
      %57 = arith.addf %55, %56 : vector<16x128xf32>
      %58 = arith.negf %57 : vector<16x128xf32>
      %59 = math.exp %58 : vector<16x128xf32>
      %cst_35 = arith.constant 1.000000e+00 : f32
      %60 = vector.broadcast %cst_35 : f32 to vector<16x128xf32>
      %61 = arith.addf %60, %59 : vector<16x128xf32>
      %62 = arith.divf %60, %61 : vector<16x128xf32>
      %63 = vector.extract_strided_slice %41 {offsets = [0, 256], sizes = [16, 128], strides = [1, 1]} : vector<16x384xf32> to vector<16x128xf32>
      %64 = vector.extract_strided_slice %46 {offsets = [0, 256], sizes = [16, 128], strides = [1, 1]} : vector<16x384xf32> to vector<16x128xf32>
      %65 = arith.mulf %54, %64 : vector<16x128xf32>
      %66 = arith.addf %63, %65 : vector<16x128xf32>
      %67 = math.tanh %66 : vector<16x128xf32>
      %cst_36 = arith.constant 1.000000e+00 : f32
      %68 = vector.broadcast %cst_36 : f32 to vector<16x128xf32>
      %69 = arith.subf %68, %62 : vector<16x128xf32>
      %70 = arith.mulf %69, %67 : vector<16x128xf32>
      %71 = arith.mulf %62, %35 : vector<16x128xf32>
      %72 = arith.addf %70, %71 : vector<16x128xf32>
      %c0_37 = arith.constant 0 : index
      %c0_38 = arith.constant 0 : index
      %73 = vector.load %arg11[%c0_37, %c0_38] : memref<16x128xf32, #tpu.memory_space<vmem>>, vector<16x128xf32>
      tpu.vector_store %arg11[%c0_37, %c0_38], %72 {strides = array<i32>} : memref<16x128xf32, #tpu.memory_space<vmem>>, vector<16x128xf32>,
    } else {
    }
    return
  }
  func.func @transform_0(%arg0: i32, %arg1: i32, %arg2: memref<256xi32, #tpu.memory_space<smem>>, %arg3: memref<256xi32, #tpu.memory_space<smem>>) -> (i32, i32) {
    %c0_i32 = arith.constant 0 : i32
    %c0_i32_0 = arith.constant 0 : i32
    %c0_i32_1 = arith.constant 0 : i32
    return %c0_i32, %c0_i32_0 : i32, i32
  }
  func.func @transform_1(%arg0: i32, %arg1: i32, %arg2: memref<256xi32, #tpu.memory_space<smem>>, %arg3: memref<256xi32, #tpu.memory_space<smem>>) -> (i32, i32) {
    %c0_i32 = arith.constant 0 : i32
    %c0_i32_0 = arith.constant 0 : i32
    return %arg1, %c0_i32 : i32, i32
  }
  func.func @transform_2(%arg0: i32, %arg1: i32, %arg2: memref<256xi32, #tpu.memory_space<smem>>, %arg3: memref<256xi32, #tpu.memory_space<smem>>) -> (i32, i32) {
    %c0_i32 = arith.constant 0 : i32
    %c0_i32_0 = arith.constant 0 : i32
    %c0_i32_1 = arith.constant 0 : i32
    return %c0_i32, %c0_i32_0 : i32, i32
  }
  func.func @transform_3(%arg0: i32, %arg1: i32, %arg2: memref<256xi32, #tpu.memory_space<smem>>, %arg3: memref<256xi32, #tpu.memory_space<smem>>) -> (i32, i32) {
    %c0_i32 = arith.constant 0 : i32
    %c0_i32_0 = arith.constant 0 : i32
    %c0_i32_1 = arith.constant 0 : i32
    return %c0_i32, %c0_i32_0 : i32, i32
  }
  func.func @transform_4(%arg0: i32, %arg1: i32, %arg2: memref<256xi32, #tpu.memory_space<smem>>, %arg3: memref<256xi32, #tpu.memory_space<smem>>) -> (i32, i32) {
    %c0_i32 = arith.constant 0 : i32
    %c0_i32_0 = arith.constant 0 : i32
    %c0_i32_1 = arith.constant 0 : i32
    return %c0_i32, %c0_i32_0 : i32, i32
  }
  func.func @transform_5(%arg0: i32, %arg1: i32, %arg2: memref<256xi32, #tpu.memory_space<smem>>, %arg3: memref<256xi32, #tpu.memory_space<smem>>) -> (i32, i32) {
    %c0_i32 = arith.constant 0 : i32
    %c0_i32_0 = arith.constant 0 : i32
    %c0_i32_1 = arith.constant 0 : i32
    return %c0_i32, %c0_i32_0 : i32, i32
  }
  func.func @transform_6(%arg0: i32, %arg1: i32, %arg2: memref<256xi32, #tpu.memory_space<smem>>, %arg3: memref<256xi32, #tpu.memory_space<smem>>) -> (i32, i32) {
    %c0_i32 = arith.constant 0 : i32
    %c0_i32_0 = arith.constant 0 : i32
    %c0_i32_1 = arith.constant 0 : i32
    return %c0_i32, %c0_i32_0 : i32, i32
  }
  func.func @transform_7(%arg0: i32, %arg1: i32, %arg2: memref<256xi32, #tpu.memory_space<smem>>, %arg3: memref<256xi32, #tpu.memory_space<smem>>) -> (i32, i32) {
    %c0_i32 = arith.constant 0 : i32
    %c0_i32_0 = arith.constant 0 : i32
    %c0_i32_1 = arith.constant 0 : i32
    return %c0_i32, %c0_i32_0 : i32, i32
  }
}

</mosaic_0001>

<bundles_post_ra>
// kernel: tpu_custom_call.1
= control target key start
LH: loop header
LB: loop body
LE: loop exit
PB: predicated region body
PF: predicated region fallthrough
CT: control target
= control target key end

     0   :  { %s3368_s0 = inlined_call_operand.vmem [shape: s32[256], index: 0, kind: input, shape index: {}]   ;;  %s3369_s2 = inlined_call_operand.vmem [shape: f32[16,128], index: 2, kind: input, shape index: {}]   ;;  %s3370_s3 = inlined_call_operand.vmem [shape: f32[256,5], index: 3, kind: input, shape index: {}]   ;;  %s3371_s4 = inlined_call_operand.hbm [shape: f32[640,128], index: 4, kind: input, shape index: {}]   ;;  %s3372_s5 = inlined_call_operand.hbm [shape: f32[128,384], index: 5, kind: input, shape index: {}]   ;;  %s3373_s6 = inlined_call_operand.hbm [shape: f32[128,384], index: 6, kind: input, shape index: {}]   ;;  %s3374_s7 = inlined_call_operand.vmem [shape: f32[1,384], index: 7, kind: input, shape index: {}]   ;;  %s3375_s8 = inlined_call_operand.vmem [shape: f32[1,384], index: 8, kind: input, shape index: {}]   ;;  %s3376_s9 = inlined_call_operand.hbm [shape: f32[16,128], index: 9, kind: output, shape index: {}]   ;;  %s3377_s1 = inlined_call_operand.vmem [shape: s32[256], index: 1, kind: input, shape index: {}]  }
   0x1   :  { %s14_s11 = sshll.u32 %s3368_s0, 4  ;;  %s18_s14 = sshll.u32 %s3377_s1, 4  ;;  %s15_s11 = int_to_ptr.vmem [resolvable:$true] %s14_s11  ;;  %s19_s14 = int_to_ptr.vmem [resolvable:$true] %s18_s14 }
   0x2   :  { %s2534_s15 = scalar_lea.vmem %s15_s11, 32  ;;  %p2539_p1 = scmp.lt.s32.totalorder %s15_s11, %s15_s11 }
   0x3   :  { %p2535_p0 = scmp.ne.s32.totalorder %s15_s11, %s2534_s15  ;;  %p2540_p2 = scmp.lt.s32.totalorder %s2534_s15, %s2534_s15 }
   0x5   :  { %p2541_p3 = por %p2540_p2, %p2539_p1 }
   0x7   :  { %p2542_p4 = pnand %p2541_p3, %p2535_p0 }
   0x9   :  { %2545 = shalt.err (!%p2542_p4)  }
   0xa   :  { %s2730_s16 = smov [#allocation6]   ;;  %s2546_s17 = scalar_lea.vmem %s19_s14, 32 }
   0xb   :  { %17 = dma.vmem_to_smem %s15_s11, 32, %s2730_s16, [#allocation5] }
   0xc   :  { %p2547_p5 = scmp.ne.s32.totalorder %s19_s14, %s2546_s17  ;;  %p2551_p6 = scmp.lt.s32.totalorder %s19_s14, %s19_s14 }
   0xd   :  { %p2552_p7 = scmp.lt.s32.totalorder %s2546_s17, %s2546_s17 }
   0xf   :  { %p2553_p8 = por %p2552_p7, %p2551_p6 }
  0x11   :  { %p2554_p9 = pnand %p2553_p8, %p2547_p5 }
  0x13   :  { %2557 = shalt.err (!%p2554_p9)  }
  0x14   :  { %s2731_s0 = smov [#allocation7]  }
  0x15   :  { %21 = dma.vmem_to_smem %s19_s14, 32, %s2731_s0, [#allocation5] }
  0x16   :  { %2688 = dma.done.wait [#allocation5], 64 }
  0x17   :  { %2689 = vsyncadd [#allocation5], 4294967232 }
  0x18   :  { %23 = sfence }
  0x19   :  { %24 = vsyncpa [#allocation9], 0 }
  0x1a   :  { %25 = vsyncpa [#allocation12], 0 }
  0x1b   :  { %26 = vsyncpa [#allocation10], 0  ;;  %s2805_s1 = smov 0   ;;  %s2807_s18 = smov 0  }
  0x1c   :  { %s2809_s19 = smov 0   ;;  %s2811_s20 = smov 0  }
  0x1d   :  { %s2813_s21 = smov 0  }
  0x1e LB: > { %s2732_s22 = smov [#allocation11]   ;;  %s1947_s24 = sadd.s32 4294967295, %s2720_s21   ;;  %s2720_s21 = sphi %s2813_s21, %s32_s21   ;;  %s2716_s20 = sphi %s2811_s20, %s3409_s20   ;;  %s2712_s19 = sphi %s2809_s19, %s3408_s19   ;;  %s2708_s18 = sphi %s2807_s18, %s3407_s18   ;;  %s2704_s1 = sphi %s2805_s1, %s3406_s1  }
  0x1f   : > { %s250_s23 = sshll.u32 %s2732_s22, 4  ;;  %p1948_p10 = scmp.ge.s32.totalorder %s2720_s21, 1  ;;  %s251_s23 = int_to_ptr.vmem [resolvable:$true] %s250_s23 }
  0x20   : > { %p222_p11 = scmp.lt.s32.totalorder %s2720_s21, 7  ;;  %p2835_p12 = scmp.eq.s32.totalorder %s1947_s24, 0 }
  0x21   : > { %s2569_s28 = scalar_lea.vmem %s251_s23, 6144  ;;  %p2577_p6 = scmp.lt.s32.totalorder %s251_s23, %s251_s23 }
  0x22   : > { %p2839_p13 = pnand %p1948_p10, %p222_p11  ;;  %p2570_p3 = scmp.ne.s32.totalorder %s251_s23, %s2569_s28 }
  0x23   : > { %p2578_p7 = scmp.lt.s32.totalorder %s2569_s28, %s2569_s28 }
  0x24   : > { %p2372_p0 = pneg %p2839_p13 }
  0x25   : > { %p2579_p8 = por %p2578_p7, %p2577_p6 }
  0x26   : > { %p2847_p1 = pnand %p2835_p12, %p2372_p0 }
  0x28   : > { %p2560_p2 = pneg %p2847_p1 }
  0x2a   : > { %p2572_p4 = pnand %p2570_p3, %p2560_p2 }
  0x2c   : > { %p2573_p5 = pneg %p2572_p4 }
  0x2e   : > { %p2580_p9 = pnand %p2579_p8, %p2573_p5 }
  0x30   : > { %2583 = shalt.err (!%p2580_p9)
}
  0x31   : > { %s2733_s29 = smov 384   ;;  %s2734_s30 = smov 24  }
  0x32   : > { %2378 = dma.hbm_to_vmem [thread:$0]  (!%p2847_p1), %s3372_s5, 6144, %s251_s23, [#allocation12], %s2733_s29, %s2733_s29, %s2734_s30  }
  0x33   : > { %s41_s12 = sadd.s32 1, %s2712_s19  ;;  %s44_s13 = sadd.s32 1, %s2716_s20 }
  0x34   : > { %p42_p10 = scmp.ge.s32.totalorder %s41_s12, 2  ;;  %s2735_s14 = smov [#allocation8]  }
  0x35   : > { %s237_s15 = sshll.u32 %s2735_s14, 4  ;;  %s238_s15 = int_to_ptr.vmem [resolvable:$true] %s237_s15 }
  0x36   : > { %s3411_s12 = smov (%p42_p10, %s41_s12), 0  ;;  %s3413_s13 = smov (!%p42_p10, %s44_s13), %s2716_s20 }
  0x37   : > { %p46_p11 = scmp.ge.s32.totalorder %s3413_s13, 3  ;;  %s2595_s16 = scalar_lea.vmem %s238_s15, 10240 }
  0x38   : > { %p2596_p0 = scmp.ne.s32.totalorder %s238_s15, %s2595_s16  ;;  %p2603_p5 = scmp.lt.s32.totalorder %s238_s15, %s238_s15 }
  0x39   : > { %p2604_p6 = scmp.lt.s32.totalorder %s2595_s16, %s2595_s16 }
  0x3a   : > { %p2598_p3 = pnand %p2596_p0, %p2560_p2 }
  0x3b   : > { %p2605_p7 = por %p2604_p6, %p2603_p5 }
  0x3c   : > { %p2599_p4 = pneg %p2598_p3 }
  0x3e   : > { %p2606_p8 = pnand %p2605_p7, %p2599_p4 }
  0x40   : > { %2609 = shalt.err (!%p2606_p8)
}
  0x41   : > { %s2736_s17 = smov 128   ;;  %s2737_s0 = smov 8  }
  0x42   : > { %2375 = dma.hbm_to_vmem [thread:$0]  (!%p2847_p1), %s3371_s4, 10240, %s238_s15, [#allocation9], %s2736_s17, %s2736_s17, %s2737_s0  }
  0x43   : > { %s3415_s13 = smov (%p46_p11, %s3413_s13), 0  ;;  %s2738_s28 = smov [#allocation13]  }
  0x44   : > { %s263_s10 = sshll.u32 %s2738_s28, 4  ;;  %s264_s10 = int_to_ptr.vmem [resolvable:$true] %s263_s10 }
  0x45   : > { %s2621_s11 = scalar_lea.vmem %s264_s10, 6144  ;;  %p2629_p3 = scmp.lt.s32.totalorder %s264_s10, %s264_s10 }
  0x46   : > { %p2622_p9 = scmp.ne.s32.totalorder %s264_s10, %s2621_s11  ;;  %p2630_p4 = scmp.lt.s32.totalorder %s2621_s11, %s2621_s11 }
  0x48   : > { %p2624_p10 = pnand %p2622_p9, %p2560_p2  ;;  %p2631_p5 = por %p2630_p4, %p2629_p3 }
  0x4a   : > { %p2625_p0 = pneg %p2624_p10 }
  0x4c   : > { %p2632_p6 = pnand %p2631_p5, %p2625_p0 }
  0x4e   : > { %2635 = shalt.err (!%p2632_p6)
}
  0x4f   : > { %2381 = dma.hbm_to_vmem [thread:$0]  (!%p2847_p1), %s3373_s6, 6144, %s264_s10, [#allocation12], %s2733_s29, %s2733_s29, %s2734_s30  }
  0x50   : > { %294 = sbr.rel (%p2839_p13) target bundleno = 1032 (0x408), region = 48 }
  0x55   : > { %2691 = dma.done.wait (%p2835_p12), [#allocation9], 10240  }
  0x56   : > { %2693 = vsyncadd (%p2835_p12), [#allocation9], 4294957056 }
  0x57   : > { %2695 = dma.done.wait (%p2835_p12), [#allocation12], 12288  }
  0x58   : > { %2697 = vsyncadd (%p2835_p12), [#allocation12], 4294955008  ;;  %s1957_s27 = sshll.u32 %s2704_s1, 4  ;;  %s1959_s29 = sshll.u32 %s2704_s1, 7 }
  0x59   : > { %p330_p1 = scmp.lt.s32.totalorder %s1957_s27, 31  ;;  %p336_p13 = scmp.eq.s32.totalorder %s2708_s18, 0 }
  0x5a   : > { %p337_p2 = scmp.eq.s32.totalorder %s2704_s1, 0 }
  0x5b   : > { %s3417_s27 = smov (!%p330_p1, %s1957_s27), 31 }
  0x5c   : > { %p338_p11 = pnand %p337_p2, %p336_p13  ;;  %s1958_s26 = sshll.u32 %s3417_s27, 3 }
  0x5d   : > { %s2907_s17 = scalar_lea.vmem %s3370_s3, %s1958_s26 }
  0x5e   : > { %341 = sbr.rel (%p338_p11) target bundleno = 101 (0x65), region = 64 }
  0x63   : > { %v342_v0 = vld [vmem:[%s3369_s2] sm:$0xff]  ;;  %v343_v1 = vld [vmem:[%s3369_s2 + $0x8] sm:$0xff] }
  0x64   : > { %344 = vst [vmem:[#allocation14] sm:$0xff] %v342_v0  ;;  %345 = vst [vmem:[#allocation14 + $0x8] sm:$0xff] %v343_v1 }
  0x65 PF: > { %p1960_p12 = scmp.ne.s32.totalorder %s2704_s1, 0 }
  0x67   : > { %348 = sbr.rel (%p1960_p12) target bundleno = 110 (0x6e), region = 68 }
  0x6c   : > { %v2739_v2 = vmov 0.0  }
  0x6d   : > { %349 = vst [vmem:[#allocation4] sm:$0xff] %v2739_v2  ;;  %350 = vst [vmem:[#allocation4 + $0x8] sm:$0xff] %v2739_v2 }
  0x6e PF: > { %s2722_s18 = smov 0  }
  0x6f LB: >> { %s357_s28 = sadd.s32 %s2724_s18, %s1959_s29  ;;  %s361_s14 = scalar_lea.vmem [#allocation2], %s2724_s18  ;;  %s2724_s18 = sphi %s2722_s18, %s356_s18  }
  0x70   : >> { %s358_s10 = sld [smem:[#allocation6 + %s357_s28]]  ;;  %s356_s18 = sadd.s32 1, %s2724_s18  }
  0x71   : >> { %p353_p7 = scmp.ge.s32.totalorder %s356_s18, 128  }
  0x72   : > { %v2919_v4 = vld [vmem:[%s2907_s17] sm:$0xff] (%p353_p7)  ;;  %v2740_v5 = vmov (%p353_p7), 3   ;;  %v2741_v6 = vmov (%p353_p7), 0   ;;  %v2926_v7 = vld [vmem:[%s2907_s17 + $0x8] sm:$0xff] (%p353_p7)  ;;  %v2742_v12 = vmov (%p353_p7), 2   ;;  %v872_v13 = vld [vmem:[#allocation8 + $0x1e8] sm:$0xff] (%p353_p7) }
  0x73   : > { %2465 = vset.pattern.permute.xlu0 (%p353_p7), %v2740_v5  ;;  %2466 = vset.pattern.permute.xlu1 (%p353_p7), %v2741_v6  ;;  %v874_v8 = vld [vmem:[#allocation8 + $0x1f8] sm:$0xff] (%p353_p7)  ;;  %v873_v10 = vld [vmem:[#allocation8 + $0x1f0] sm:$0xff] (%p353_p7)  ;;  %v2932_v14 = vld [vmem:[%s2907_s17 + $0x18] sm:$0xff] (%p353_p7)  ;;  %v2743_v21 = vmov (%p353_p7), 1   ;;  %s2726_s15 = smov (%p353_p7), 0  }
  0x74   : > { %355 = sbr.rel (!%p353_p7) target bundleno = 111 (0x6f), region = 118  ;;  %397 = vperm.xlu1 (%p353_p7), %2466, %v2919_v4   ;;  %652 = vperm.xlu0 (%p353_p7), %2465, %v2919_v4   ;;  %v858_v9 = vld [vmem:[#allocation8 + $0x178] sm:$0xff] (%p353_p7)  ;;  %v857_v11 = vld [vmem:[#allocation8 + $0x170] sm:$0xff] (%p353_p7)  ;;  %v856_v15 = vld [vmem:[#allocation8 + $0x168] sm:$0xff] (%p353_p7) }
  0x75   : > { %2050 = vmatprep.subr.mxu1 (%p353_p7), %v874_v8  ;;  %v871_v16 = vld [vmem:[#allocation8 + $0x1e0] sm:$0xff] (%p353_p7)  ;;  %v842_v17 = vld [vmem:[#allocation8 + $0xf8] sm:$0xff] (%p353_p7)  ;;  %v869_v24 = vld [vmem:[#allocation8 + $0x1d0] sm:$0xff] (%p353_p7) }
  0x76   : >> { %s359_s11 = scalar_lea.vmem [#allocation14], %s358_s10  ;;  %2051 = vmatpush3.msra.mxu1 (%p353_p7), %v858_v9  ;;  %v855_v18 = vld [vmem:[#allocation8 + $0x160] sm:$0xff] (%p353_p7)  ;;  %1970 = vmatprep.subr.mxu0 (%p353_p7), %v842_v17  ;;  %v870_v19 = vld [vmem:[#allocation8 + $0x1d8] sm:$0xff] (%p353_p7)  ;;  %v841_v25 = vld [vmem:[#allocation8 + $0xf0] sm:$0xff] (%p353_p7) }
  0x77   : >> { %v360_v3 = vld [vmem:[%s359_s11] sm:$0x1]  ;;  %2052 = vmatprep.subr.mxu1 (%p353_p7), %v873_v10  ;;  %v826_v20 = vld [vmem:[#allocation8 + $0x78] sm:$0xff] (%p353_p7)  ;;  %v2937_v22 = vld [vmem:[%s2907_s17 + $0x30] sm:$0xff] (%p353_p7) }
  0x78   : >> { %362 = vst [vmem:[%s361_s14] sm:$0x1] %v360_v3  ;;  %2467 = vset.pattern.permute.xlu1 (%p353_p7), %v2742_v12  ;;  %656 = vperm.xlu0 (%p353_p7), %2465, %v2926_v7   ;;  %v854_v23 = vld [vmem:[#allocation8 + $0x158] sm:$0xff] (%p353_p7)  ;;  %v853_v26 = vld [vmem:[#allocation8 + $0x150] sm:$0xff] (%p353_p7)  ;;  %v868_v27 = vld [vmem:[#allocation8 + $0x1c8] sm:$0xff] (%p353_p7) }
  0x79   : > { %572 = vperm.xlu1 %2467, %v2919_v4   ;;  %2053 = vmatpush3.msra.mxu1 %v857_v11  ;;  %v852_v28 = vld [vmem:[#allocation8 + $0x148] sm:$0xff]  ;;  %v867_v29 = vld [vmem:[#allocation8 + $0x1c0] sm:$0xff]  ;;  %v825_v31 = vld [vmem:[#allocation8 + $0x70] sm:$0xff] }
  0x7a   : > { %2054 = vmatprep.subr.mxu1 %v872_v13  ;;  %1971 = vmatpush3.msra.mxu0 %v826_v20  ;;  %v851_v30 = vld [vmem:[#allocation8 + $0x140] sm:$0xff]  ;;  %v866_v32 = vld [vmem:[#allocation8 + $0x1b8] sm:$0xff]  ;;  %v840_v34 = vld [vmem:[#allocation8 + $0xe8] sm:$0xff] }
  0x7b   : > { %2055 = vmatpush3.msra.mxu1 %v856_v15  ;;  %1972 = vmatprep.subr.mxu0 %v841_v25  ;;  %v2946_v33 = vld [vmem:[%s2907_s17 + $0x10] sm:$0xff]  ;;  %v2949_v35 = vld [vmem:[%s2907_s17 + $0x20] sm:$0xff]  ;;  %v850_v36 = vld [vmem:[#allocation8 + $0x138] sm:$0xff] }
  0x7c   : > { %664 = vperm.xlu0 %2465, %v2932_v14   ;;  %2056 = vmatprep.subr.mxu1 %v871_v16  ;;  %v824_v37 = vld [vmem:[#allocation8 + $0x68] sm:$0xff]  ;;  %v865_v38 = vld [vmem:[#allocation8 + $0x1b0] sm:$0xff]  ;;  %v839_v39 = vld [vmem:[#allocation8 + $0xe0] sm:$0xff] }
  0x7d   : > { %2468 = vset.pattern.permute.xlu1 %v2743_v21  ;;  %2057 = vmatpush3.msra.mxu1 %v855_v18  ;;  %v849_v40 = vld [vmem:[#allocation8 + $0x130] sm:$0xff]  ;;  %v823_v41 = vld [vmem:[#allocation8 + $0x60] sm:$0xff]  ;;  %v2955_v42 = vld [vmem:[%s2907_s17 + $0x38] sm:$0xff] }
  0x7e   : > { %496 = vperm.xlu1 %2468, %v2926_v7   ;;  %2058 = vmatprep.subr.mxu1 %v870_v19  ;;  %v864_v43 = vld [vmem:[#allocation8 + $0x1a8] sm:$0xff]  ;;  %v838_v44 = vld [vmem:[#allocation8 + $0xd8] sm:$0xff]  ;;  %v863_v47 = vld [vmem:[#allocation8 + $0x1a0] sm:$0xff] }
  0x7f   : > { %2059 = vmatpush3.msra.mxu1 %v854_v23  ;;  %1973 = vmatpush3.msra.mxu0 %v825_v31  ;;  %v848_v45 = vld [vmem:[#allocation8 + $0x128] sm:$0xff]  ;;  %v822_v46 = vld [vmem:[#allocation8 + $0x58] sm:$0xff]  ;;  %v837_v48 = vld [vmem:[#allocation8 + $0xd0] sm:$0xff] }
  0x80   : > { %676 = vperm.xlu0 %2465, %v2937_v22   ;;  %2060 = vmatprep.subr.mxu1 %v869_v24  ;;  %v2961_v49 = vld [vmem:[%s2907_s17 + $0x50] sm:$0xff]  ;;  %v821_v51 = vld [vmem:[#allocation8 + $0x50] sm:$0xff]  ;;  %v862_v52 = vld [vmem:[#allocation8 + $0x198] sm:$0xff] }
  0x81   : > { %2061 = vmatpush3.msra.mxu1 %v853_v26  ;;  %1974 = vmatprep.subr.mxu0 %v840_v34  ;;  %v847_v50 = vld [vmem:[#allocation8 + $0x120] sm:$0xff]  ;;  %v836_v53 = vld [vmem:[#allocation8 + $0xc8] sm:$0xff]  ;;  %v846_v54 = vld [vmem:[#allocation8 + $0x118] sm:$0xff] }
  0x82   : > { %2469 = vset.pattern.permute.xlu1 %v2741_v6  ;;  %2062 = vmatprep.subr.mxu1 %v868_v27  ;;  %v2967_v55 = vld [vmem:[%s2907_s17 + $0x68] sm:$0xff]  ;;  %v820_v56 = vld [vmem:[#allocation8 + $0x48] sm:$0xff]  ;;  %v861_v57 = vld [vmem:[#allocation8 + $0x190] sm:$0xff] }
  0x83   : > { %402 = vperm.xlu1 %2469, %v2926_v7   ;;  %2063 = vmatpush3.msra.mxu1 %v852_v28  ;;  %v835_v58 = vld [vmem:[#allocation8 + $0xc0] sm:$0xff]  ;;  %v845_v59 = vld [vmem:[#allocation8 + $0x110] sm:$0xff]  ;;  %v860_v61 = vld [vmem:[#allocation8 + $0x188] sm:$0xff] }
  0x84   : > { %2482 = vset.pattern.permute.xlu0 %v2743_v21  ;;  %2064 = vmatprep.subr.mxu1 %v867_v29  ;;  %v819_v60 = vld [vmem:[#allocation8 + $0x40] sm:$0xff]  ;;  %v834_v62 = vld [vmem:[#allocation8 + $0xb8] sm:$0xff]  ;;  %v844_v63 = vld [vmem:[#allocation8 + $0x108] sm:$0xff] }
  0x85   : > { %492 = vperm.xlu0 %2482, %v2919_v4   ;;  %2065 = vmatpush3.msra.mxu1 %v851_v30  ;;  %v818_v0 = vld [vmem:[#allocation8 + $0x38] sm:$0xff]  ;;  %v859_v1 = vld [vmem:[#allocation8 + $0x180] sm:$0xff]  ;;  %v833_v2 = vld [vmem:[#allocation8 + $0xb0] sm:$0xff] }
  0x86   : > { %2066 = vmatprep.subr.mxu1 %v866_v32  ;;  %1975 = vmatpush3.msra.mxu0 %v824_v37  ;;  %v843_v3 = vld [vmem:[#allocation8 + $0x100] sm:$0xff]  ;;  %v817_v8 = vld [vmem:[#allocation8 + $0x30] sm:$0xff]  ;;  %v832_v9 = vld [vmem:[#allocation8 + $0xa8] sm:$0xff]  ;;  %v2744_v32 = vmov 4  }
  0x87   : > { %2470 = vset.pattern.permute.xlu1 %v2743_v21  ;;  %2067 = vmatpush3.msra.mxu1 %v850_v36  ;;  %v816_v10 = vld [vmem:[#allocation8 + $0x28] sm:$0xff]  ;;  %v831_v11 = vld [vmem:[#allocation8 + $0xa0] sm:$0xff]  ;;  %v830_v15 = vld [vmem:[#allocation8 + $0x98] sm:$0xff] }
  0x88   : > { %500 = vperm.xlu1 %2470, %v2946_v33   ;;  %2068 = vmatprep.subr.mxu1 %v865_v38  ;;  %v815_v13 = vld [vmem:[#allocation8 + $0x20] sm:$0xff]  ;;  %v814_v16 = vld [vmem:[#allocation8 + $0x18] sm:$0xff]  ;;  %v829_v17 = vld [vmem:[#allocation8 + $0x90] sm:$0xff] }
  0x89   : > { %508 = vperm.xlu0 %2482, %v2949_v35   ;;  %1976 = vmatprep.subr.mxu0 %v839_v39  ;;  %v813_v18 = vld [vmem:[#allocation8 + $0x10] sm:$0xff]  ;;  %v828_v19 = vld [vmem:[#allocation8 + $0x88] sm:$0xff]  ;;  %v827_v23 = vld [vmem:[#allocation8 + $0x80] sm:$0xff] }
  0x8a   : > { %2069 = vmatpush3.msra.mxu1 %v849_v40  ;;  %1977 = vmatpush3.msra.mxu0 %v823_v41  ;;  %v812_v20 = vld [vmem:[#allocation8 + $0x8] sm:$0xff]  ;;  %v811_v24 = vld [vmem:[#allocation8] sm:$0xff]  ;;  %v2987_v25 = vld [vmem:[%s2907_s17 + $0x28] sm:$0xff] }
  0x8b   : > { %2070 = vmatprep.subr.mxu1 %v864_v43  ;;  %1978 = vmatprep.subr.mxu0 %v838_v44  ;;  %v2997_v26 = vld [vmem:[%s2907_s17 + $0x40] sm:$0xff]  ;;  %v3001_v27 = vld [vmem:[%s2907_s17 + $0x58] sm:$0xff]  ;;  %v3007_v28 = vld [vmem:[%s2907_s17 + $0x70] sm:$0xff] }
  0x8c   : > { %2471 = vset.pattern.permute.xlu1 %v2740_v5  ;;  %2071 = vmatpush3.msra.mxu1 %v848_v45  ;;  %v388_v29 = vld [vmem:[%s2907_s17 + $0x48] sm:$0xff]  ;;  %v3017_v30 = vld [vmem:[%s2907_s17 + $0x60] sm:$0xff]  ;;  %v3023_v31 = vld [vmem:[%s2907_s17 + $0x78] sm:$0xff] }
  0x8d   : > { %660 = vperm.xlu1 %2471, %v2946_v33   ;;  %520 = vperm.xlu0 %2482, %v2955_v42   ;;  %v3046_v34 = vld [vmem:[#allocation2] sm:$0xff]  ;;  %v3050_v39 = vld [vmem:[#allocation2 + $0x8] sm:$0xff] }
  0x8e   : > { %1979 = vmatpush3.msra.mxu0 %v822_v46  ;;  %2072 = vmatprep.subr.mxu1 %v863_v47 }
  0x8f   : > { %1980 = vmatprep.subr.mxu0 %v837_v48  ;;  %2073 = vmatpush3.msra.mxu1 %v847_v50 }
  0x90   : > { %1981 = vmatpush3.msra.mxu0 %v821_v51  ;;  %2074 = vmatprep.subr.mxu1 %v862_v52 }
  0x91   : > { %2472 = vset.pattern.permute.xlu1 %v2742_v12  ;;  %532 = vperm.xlu0 %2482, %v2961_v49  }
  0x92   : > { %580 = vperm.xlu1 %2472, %v2946_v33   ;;  %1982 = vmatprep.subr.mxu0 %v836_v53 }
  0x93   : > { %2075 = vmatpush3.msra.mxu1 %v846_v54  ;;  %1983 = vmatpush3.msra.mxu0 %v820_v56  ;;  %v3065_v54 = vld [vmem:[#allocation2 + $0x10] sm:$0xff] }
  0x94   : > { %2076 = vmatprep.subr.mxu1 %v861_v57  ;;  %1984 = vmatprep.subr.mxu0 %v835_v58 }
  0x95   : > { %544 = vperm.xlu0 %2482, %v2967_v55   ;;  %2077 = vmatpush3.msra.mxu1 %v845_v59 }
  0x96   : > { %2473 = vset.pattern.permute.xlu1 %v2743_v21  ;;  %1985 = vmatpush3.msra.mxu0 %v819_v60 }
  0x97   : > { %504 = vperm.xlu1 %2473, %v2932_v14   ;;  %2078 = vmatprep.subr.mxu1 %v860_v61 }
  0x98   : > { %1986 = vmatprep.subr.mxu0 %v834_v62  ;;  %2079 = vmatpush3.msra.mxu1 %v844_v63 }
  0x99   : > { %2501 = vset.pattern.permute.xlu0 %v2742_v12  ;;  %1987 = vmatpush3.msra.mxu0 %v818_v0  ;;  %v890_v0 = vld [vmem:[#allocation8 + $0x278] sm:$0xff] }
  0x9a   : > { %576 = vperm.xlu0 %2501, %v2926_v7   ;;  %2080 = vmatprep.subr.mxu1 %v859_v1 }
  0x9b   : > { %2474 = vset.pattern.permute.xlu1 %v2741_v6  ;;  %1988 = vmatprep.subr.mxu0 %v833_v2 }
  0x9c   : > { %412 = vperm.xlu1 %2474, %v2932_v14   ;;  %2081 = vmatpush3.msra.mxu1 %v843_v3 }
  0x9d   : > { %1989 = vmatpush3.msra.mxu0 %v817_v8  ;;  %2324 = vmatprep.subr.mxu1 %v890_v0 }
  0x9e   : > { %588 = vperm.xlu0 %2501, %v2949_v35   ;;  %1990 = vmatprep.subr.mxu0 %v832_v9  ;;  %v889_v9 = vld [vmem:[#allocation8 + $0x270] sm:$0xff] }
  0x9f   : > { %1991 = vmatpush3.msra.mxu0 %v816_v10  ;;  %v3091_v10 = vld [vmem:[#allocation2 + $0x18] sm:$0xff] }
  0xa0   : > { %2475 = vset.pattern.permute.xlu1 %v2742_v12  ;;  %1992 = vmatprep.subr.mxu0 %v831_v11 }
  0xa1   : > { %584 = vperm.xlu1 %2475, %v2932_v14   ;;  %1993 = vmatpush3.msra.mxu0 %v815_v13 }
  0xa2   : > { %600 = vperm.xlu0 %2501, %v2955_v42   ;;  %1994 = vmatprep.subr.mxu0 %v830_v15 }
  0xa3   : > { %1995 = vmatpush3.msra.mxu0 %v814_v16  ;;  %v888_v16 = vld [vmem:[#allocation8 + $0x268] sm:$0xff] }
  0xa4   : > { %1996 = vmatprep.subr.mxu0 %v829_v17 }
  0xa5   : > { %2476 = vset.pattern.permute.xlu1 %v2740_v5  ;;  %1997 = vmatpush3.msra.mxu0 %v813_v18 }
  0xa6   : > { %668 = vperm.xlu1 %2476, %v2949_v35   ;;  %612 = vperm.xlu0 %2501, %v2961_v49  }
  0xa7   : > { %1998 = vmatprep.subr.mxu0 %v828_v19 }
  0xa8   : > { %1999 = vmatpush3.msra.mxu0 %v812_v20  ;;  %v3102_v20 = vld [vmem:[#allocation2 + $0x20] sm:$0xff] }
  0xa9   : > { %2000 = vmatprep.subr.mxu0 %v827_v23  ;;  %v887_v23 = vld [vmem:[#allocation8 + $0x260] sm:$0xff] }
  0xaa   : > { %2477 = vset.pattern.permute.xlu1 %v2741_v6  ;;  %624 = vperm.xlu0 %2501, %v2967_v55  }
  0xab   : > { %417 = vperm.xlu1 %2477, %v2949_v35   ;;  %2001 = vmatpush3.msra.mxu0 %v811_v24 }
  0xac   : > { %2198 = vmatprep.subr.mxu0 %v890_v0 }
  0xae   : > { %2504 = vset.pattern.permute.xlu0 %v2741_v6 }
  0xaf   : > { %2478 = vset.pattern.permute.xlu1 %v2743_v21  ;;  %407 = vperm.xlu0 %2504, %v2946_v33  }
  0xb0   : > { %512 = vperm.xlu1 %2478, %v2987_v25  }
  0xb3   : > { %422 = vperm.xlu0 %2504, %v2987_v25  }
  0xb4   : > { %2479 = vset.pattern.permute.xlu1 %v2740_v5 }
  0xb5   : > { %672 = vperm.xlu1 %2479, %v2987_v25  }
  0xb7   : > { %437 = vperm.xlu0 %2504, %v2997_v26  }
  0xb9   : > { %2480 = vset.pattern.permute.xlu1 %v2742_v12 }
  0xba   : > { %592 = vperm.xlu1 %2480, %v2987_v25  }
  0xbb   : > { %452 = vperm.xlu0 %2504, %v3001_v27  }
  0xbe   : > { %2481 = vset.pattern.permute.xlu1 %v2743_v21 }
  0xbf   : > { %516 = vperm.xlu1 %2481, %v2937_v22   ;;  %467 = vperm.xlu0 %2504, %v3007_v28  }
  0xc3   : > { %2483 = vset.pattern.permute.xlu1 %v2741_v6  ;;  %2507 = vset.pattern.permute.xlu0 %v2740_v5 }
  0xc4   : > { %427 = vperm.xlu1 %2483, %v2937_v22   ;;  %688 = vperm.xlu0 %2507, %v388_v29  }
  0xc8   : > { %2484 = vset.pattern.permute.xlu1 %v2742_v12  ;;  %700 = vperm.xlu0 %2507, %v3017_v30  }
  0xc9   : > { %596 = vperm.xlu1 %2484, %v2937_v22  }
  0xcc   : > { %712 = vperm.xlu0 %2507, %v3023_v31  }
  0xcd   : > { %2485 = vset.pattern.permute.xlu1 %v2740_v5 }
  0xce   : > { %680 = vperm.xlu1 %2485, %v2955_v42  }
  0xd0   : > { %2512 = vset.pattern.permute.xlu0 %v2744_v32 }
  0xd1   : > { %732 = vperm.xlu0 %2512, %v2919_v4  }
  0xd2   : > { %2486 = vset.pattern.permute.xlu1 %v2741_v6 }
  0xd3   : > { %432 = vperm.xlu1 %2486, %v2955_v42  }
  0xd5   : > { %768 = vperm.xlu0 %2512, %v388_v29  }
  0xd7   : > { %2487 = vset.pattern.permute.xlu1 %v2743_v21 }
  0xd8   : > { %524 = vperm.xlu1 %2487, %v2997_v26  }
  0xd9   : > { %772 = vperm.xlu0 %2512, %v2961_v49  }
  0xdc   : > { %2488 = vset.pattern.permute.xlu1 %v2740_v5 }
  0xdd   : > { %684 = vperm.xlu1 %2488, %v2997_v26   ;;  %776 = vperm.xlu0 %2512, %v3001_v27  }
  0xe1   : > { %2489 = vset.pattern.permute.xlu1 %v2742_v12  ;;  %780 = vperm.xlu0 %2512, %v3017_v30  }
  0xe2   : > { %604 = vperm.xlu1 %2489, %v2997_v26  }
  0xe5   : > { %784 = vperm.xlu0 %2512, %v2967_v55  }
  0xe6   : > { %2490 = vset.pattern.permute.xlu1 %v2743_v21 }
  0xe7   : > { %528 = vperm.xlu1 %2490, %v388_v29  }
  0xe9   : > { %788 = vperm.xlu0 %2512, %v3007_v28  }
  0xeb   : > { %2491 = vset.pattern.permute.xlu1 %v2741_v6 }
  0xec   : > { %442 = vperm.xlu1 %2491, %v388_v29  }
  0xed   : > { %792 = vperm.xlu0 %2512, %v3023_v31  }
  0xef   : > { %v398_v4 = vpop.permute.xlu1 %397  ;;  %v653_v36 = vpop.permute.xlu0 %652 }
  0xf0   : > { %2492 = vset.pattern.permute.xlu1 %v2742_v12  ;;  %v715_v37 = vmul.f32 %v653_v36, %v3046_v34  ;;  %v475_v51 = vmul.f32 %v398_v4, %v3046_v34  ;;  %v886_v4 = vld [vmem:[#allocation8 + $0x258] sm:$0xff] }
  0xf1   : > { %608 = vperm.xlu1 %2492, %v388_v29  }
  0xf2   : > { %1100 = vmatprep.mubr.f32.mxu1 %v715_v37 }
  0xf3   : > { %v657_v38 = vpop.permute.xlu0 %656 }
  0xf4   : > { %v573_v40 = vpop.permute.xlu1 %572  ;;  %v716_v41 = vmul.f32 %v657_v38, %v3050_v39  ;;  %v885_v38 = vld [vmem:[#allocation8 + $0x250] sm:$0xff] }
  0xf5   : > { %v635_v43 = vmul.f32 %v573_v40, %v3046_v34  ;;  %2493 = vset.pattern.permute.xlu1 %v2740_v5 }
  0xf6   : > { %692 = vperm.xlu1 %2493, %v2961_v49  }
  0xf7   : > { %1101 = vmatmul.mubr.f32.vlgmr.msra.gmra.mxu1 %v635_v43  ;;  %v665_v44 = vpop.permute.xlu0 %664  ;;  %v884_v43 = vld [vmem:[#allocation8 + $0x248] sm:$0xff] }
  0xf8   : > { %1105 = vmatprep.mubr.f32.mxu1 %v716_v41  ;;  %2340 = vmatpush3.msra.mxu1 %v890_v0  ;;  %v718_v11 = vmul.f32 %v665_v44, %v3091_v10 }
  0xf9   : > { %v497_v45 = vpop.permute.xlu1 %496  ;;  %2325 = vmatprep.subr.mxu1 %v889_v9 }
  0xfa   : > { %2494 = vset.pattern.permute.xlu1 %v2741_v6  ;;  %v556_v52 = vmul.f32 %v497_v45, %v3050_v39  ;;  %2341 = vmatpush3.msra.mxu1 %v889_v9 }
  0xfb   : > { %447 = vperm.xlu1 %2494, %v2961_v49   ;;  %v3058_v46 = vpop.permute.xlu0 %676  ;;  %2326 = vmatprep.subr.mxu1 %v888_v16 }
  0xfc   : > { %2342 = vmatpush3.msra.mxu1 %v888_v16 }
  0xfd   : > { %2327 = vmatprep.subr.mxu1 %v887_v23 }
  0xfe   : > { %v403_v47 = vpop.permute.xlu1 %402  ;;  %2343 = vmatpush3.msra.mxu1 %v887_v23 }
  0xff   : > { %2495 = vset.pattern.permute.xlu1 %v2743_v21  ;;  %v476_v56 = vmul.f32 %v403_v47, %v3050_v39  ;;  %2328 = vmatprep.subr.mxu1 %v886_v4  ;;  %v883_v47 = vld [vmem:[#allocation8 + $0x240] sm:$0xff] }
 0x100   : > { %536 = vperm.xlu1 %2495, %v3001_v27   ;;  %v493_v48 = vpop.permute.xlu0 %492  ;;  %2344 = vmatpush3.msra.mxu1 %v886_v4 }
 0x101   : > { %v555_v50 = vmul.f32 %v493_v48, %v3046_v34  ;;  %2329 = vmatprep.subr.mxu1 %v885_v38 }
 0x102   : > { %2345 = vmatpush3.msra.mxu1 %v885_v38 }
 0x103   : > { %v501_v53 = vpop.permute.xlu1 %500  ;;  %955 = vmatprep.mubr.f32.mxu0 %v555_v50  ;;  %2330 = vmatprep.subr.mxu1 %v884_v43  ;;  %v3123_v50 = vld [vmem:[#allocation2 + $0x28] sm:$0xff] }
 0x104   : > { %2496 = vset.pattern.permute.xlu1 %v2740_v5  ;;  %956 = vmatmul.mubr.f32.vlgmr.msra.gmra.mxu0 %v475_v51  ;;  %v3068_v49 = vpop.permute.xlu0 %508  ;;  %v557_v57 = vmul.f32 %v501_v53, %v3065_v54 }
 0x105   : > { %696 = vperm.xlu1 %2496, %v3001_v27   ;;  %960 = vmatprep.mubr.f32.mxu0 %v556_v52  ;;  %v559_v45 = vmul.f32 %v3068_v49, %v3102_v20  ;;  %v882_v49 = vld [vmem:[#allocation8 + $0x238] sm:$0xff] }
 0x106   : > { %2199 = vmatpush3.msra.mxu0 %v890_v0  ;;  %2346 = vmatpush3.msra.mxu1 %v884_v43  ;;  %v881_v0 = vld [vmem:[#allocation8 + $0x230] sm:$0xff] }
 0x107   : > { %2200 = vmatprep.subr.mxu0 %v889_v9  ;;  %2331 = vmatprep.subr.mxu1 %v883_v47 }
 0x108   : > { %v661_v58 = vpop.permute.xlu1 %660  ;;  %961 = vmatmul.mubr.f32.gmra.mxu0 %v476_v56  ;;  %v3073_v59 = vpop.permute.xlu0 %520  ;;  %v3129_v56 = vld [vmem:[#allocation2 + $0x30] sm:$0xff]  ;;  %2347 = vmatpush3.msra.mxu1 %v883_v47 }
 0x109   : > { %2497 = vset.pattern.permute.xlu1 %v2742_v12  ;;  %965 = vmatprep.mubr.f32.mxu0 %v557_v57  ;;  %v717_v3 = vmul.f32 %v661_v58, %v3065_v54  ;;  %v721_v58 = vmul.f32 %v3058_v46, %v3129_v56  ;;  %v880_v46 = vld [vmem:[#allocation8 + $0x228] sm:$0xff] }
 0x10a   : > { %616 = vperm.xlu1 %2497, %v3001_v27   ;;  %2201 = vmatpush3.msra.mxu0 %v889_v9 }
 0x10b   : > { %2202 = vmatprep.subr.mxu0 %v888_v16  ;;  %2332 = vmatprep.subr.mxu1 %v882_v49 }
 0x10c   : > { %v3077_v60 = vpop.permute.xlu0 %532  ;;  %2203 = vmatpush3.msra.mxu0 %v888_v16  ;;  %2348 = vmatpush3.msra.mxu1 %v882_v49  ;;  %v876_v16 = vld [vmem:[#allocation8 + $0x208] sm:$0xff] }
 0x10d   : > { %v581_v61 = vpop.permute.xlu1 %580  ;;  %2204 = vmatprep.subr.mxu0 %v887_v23  ;;  %2333 = vmatprep.subr.mxu1 %v881_v0 }
 0x10e   : > { %2498 = vset.pattern.permute.xlu1 %v2743_v21  ;;  %v637_v15 = vmul.f32 %v581_v61, %v3065_v54  ;;  %2205 = vmatpush3.msra.mxu0 %v887_v23 }
 0x10f   : > { %540 = vperm.xlu1 %2498, %v3017_v30   ;;  %2206 = vmatprep.subr.mxu0 %v886_v4 }
 0x110   : > { %v3081_v62 = vpop.permute.xlu0 %544  ;;  %2207 = vmatpush3.msra.mxu0 %v886_v4  ;;  %2349 = vmatpush3.msra.mxu1 %v881_v0 }
 0x111   : > { %2208 = vmatprep.subr.mxu0 %v885_v38  ;;  %2334 = vmatprep.subr.mxu1 %v880_v46 }
 0x112   : > { %v3083_v63 = vpop.permute.xlu1 %504  ;;  %2209 = vmatpush3.msra.mxu0 %v885_v38  ;;  %2350 = vmatpush3.msra.mxu1 %v880_v46 }
 0x113   : > { %2499 = vset.pattern.permute.xlu1 %v2741_v6  ;;  %v558_v44 = vmul.f32 %v3083_v63, %v3091_v10  ;;  %2210 = vmatprep.subr.mxu0 %v884_v43 }
 0x114   : > { %457 = vperm.xlu1 %2499, %v3017_v30   ;;  %2211 = vmatpush3.msra.mxu0 %v884_v43 }
 0x115   : > { %v577_v1 = vpop.permute.xlu0 %576  ;;  %2212 = vmatprep.subr.mxu0 %v883_v47 }
 0x116   : > { %v636_v2 = vmul.f32 %v577_v1, %v3050_v39  ;;  %2213 = vmatpush3.msra.mxu0 %v883_v47 }
 0x117   : > { %v3089_v8 = vpop.permute.xlu1 %412  ;;  %2214 = vmatprep.subr.mxu0 %v882_v49 }
 0x118   : > { %2500 = vset.pattern.permute.xlu1 %v2742_v12  ;;  %1106 = vmatmul.mubr.f32.gmra.mxu1 %v636_v2  ;;  %v478_v48 = vmul.f32 %v3089_v8, %v3091_v10  ;;  %v878_v8 = vld [vmem:[#allocation8 + $0x218] sm:$0xff] }
 0x119   : > { %620 = vperm.xlu1 %2500, %v3017_v30   ;;  %1110 = vmatprep.mubr.f32.mxu1 %v717_v3  ;;  %v589_v13 = vpop.permute.xlu0 %588  ;;  %v3141_v3 = vld [vmem:[#allocation2 + $0x38] sm:$0xff] }
 0x11a   : > { %v639_v24 = vmul.f32 %v589_v13, %v3102_v20  ;;  %2215 = vmatpush3.msra.mxu0 %v882_v49  ;;  %v562_v9 = vmul.f32 %v3073_v59, %v3141_v3  ;;  %v877_v13 = vld [vmem:[#allocation8 + $0x210] sm:$0xff] }
 0x11b   : > { %2216 = vmatprep.subr.mxu0 %v881_v0 }
 0x11c   : > { %v585_v17 = vpop.permute.xlu1 %584  ;;  %1111 = vmatmul.mubr.f32.gmra.mxu1 %v637_v15  ;;  %2217 = vmatpush3.msra.mxu0 %v881_v0 }
 0x11d   : > { %v638_v18 = vmul.f32 %v585_v17, %v3091_v10  ;;  %2502 = vset.pattern.permute.xlu1 %v2740_v5  ;;  %v3099_v19 = vpop.permute.xlu0 %600  ;;  %1115 = vmatprep.mubr.f32.mxu1 %v718_v11 }
 0x11e   : > { %704 = vperm.xlu1 %2502, %v2967_v55   ;;  %2218 = vmatprep.subr.mxu0 %v880_v46 }
 0x11f   : > { %2219 = vmatpush3.msra.mxu0 %v880_v46 }
 0x120   : > { %1116 = vmatmul.mubr.f32.gmra.mxu1 %v638_v18 }
 0x121   : > { %v669_v27 = vpop.permute.xlu1 %668  ;;  %v3105_v29 = vpop.permute.xlu0 %612 }
 0x122   : > { %v719_v30 = vmul.f32 %v669_v27, %v3102_v20  ;;  %2503 = vset.pattern.permute.xlu1 %v2741_v6 }
 0x123   : > { %462 = vperm.xlu1 %2503, %v2967_v55  }
 0x124   : > { %1120 = vmatprep.mubr.f32.mxu1 %v719_v30 }
 0x125   : > { %v3110_v36 = vpop.permute.xlu0 %624  ;;  %1121 = vmatmul.mubr.f32.gmra.mxu1 %v639_v24  ;;  %v3157_v24 = vld [vmem:[#allocation2 + $0x40] sm:$0xff] }
 0x126   : > { %v418_v37 = vpop.permute.xlu1 %417 }
 0x127   : > { %2505 = vset.pattern.permute.xlu1 %v2743_v21  ;;  %v479_v53 = vmul.f32 %v418_v37, %v3102_v20 }
 0x128   : > { %548 = vperm.xlu1 %2505, %v3007_v28  }
 0x12a   : > { %v408_v40 = vpop.permute.xlu0 %407 }
 0x12b   : > { %v477_v55 = vmul.f32 %v408_v40, %v3065_v54  ;;  %v513_v41 = vpop.permute.xlu1 %512  ;;  %v3167_v40 = vld [vmem:[#allocation2 + $0x48] sm:$0xff] }
 0x12c   : > { %2506 = vset.pattern.permute.xlu1 %v2740_v5  ;;  %v560_v57 = vmul.f32 %v513_v41, %v3123_v50 }
 0x12d   : > { %708 = vperm.xlu1 %2506, %v3007_v28   ;;  %966 = vmatmul.mubr.f32.gmra.mxu0 %v477_v55 }
 0x12e   : > { %970 = vmatprep.mubr.f32.mxu0 %v558_v44  ;;  %v423_v52 = vpop.permute.xlu0 %422  ;;  %v3174_v44 = vld [vmem:[#allocation2 + $0x50] sm:$0xff] }
 0x130   : > { %v673_v51 = vpop.permute.xlu1 %672 }
 0x131   : > { %v720_v5 = vmul.f32 %v673_v51, %v3123_v50  ;;  %2508 = vset.pattern.permute.xlu1 %v2742_v12  ;;  %971 = vmatmul.mubr.f32.gmra.mxu0 %v478_v48 }
 0x132   : > { %628 = vperm.xlu1 %2508, %v3007_v28   ;;  %975 = vmatprep.mubr.f32.mxu0 %v559_v45  ;;  %v480_v28 = vmul.f32 %v423_v52, %v3123_v50 }
 0x133   : > { %1125 = vmatprep.mubr.f32.mxu1 %v720_v5 }
 0x135   : > { %v593_v61 = vpop.permute.xlu1 %592  ;;  %976 = vmatmul.mubr.f32.gmra.mxu0 %v479_v53  ;;  %v3184_v53 = vld [vmem:[#allocation2 + $0x58] sm:$0xff] }
 0x136   : > { %v640_v63 = vmul.f32 %v593_v61, %v3123_v50  ;;  %2509 = vset.pattern.permute.xlu1 %v2743_v21  ;;  %980 = vmatprep.mubr.f32.mxu0 %v560_v57  ;;  %v879_v21 = vld [vmem:[#allocation8 + $0x220] sm:$0xff] }
 0x137   : > { %552 = vperm.xlu1 %2509, %v3023_v31   ;;  %2335 = vmatprep.subr.mxu1 %v879_v21 }
 0x138   : > { %1126 = vmatmul.mubr.f32.gmra.mxu1 %v640_v63  ;;  %2220 = vmatprep.subr.mxu0 %v879_v21  ;;  %v3189_v63 = vld [vmem:[#allocation2 + $0x60] sm:$0xff] }
 0x139   : > { %981 = vmatmul.mubr.f32.gmra.mxu0 %v480_v28  ;;  %1130 = vmatprep.mubr.f32.mxu1 %v721_v58 }
 0x13a   : > { %v517_v1 = vpop.permute.xlu1 %516  ;;  %2351 = vmatpush3.msra.mxu1 %v879_v21  ;;  %2221 = vmatpush3.msra.mxu0 %v879_v21 }
 0x13b   : > { %v561_v2 = vmul.f32 %v517_v1, %v3129_v56  ;;  %2510 = vset.pattern.permute.xlu1 %v2741_v6  ;;  %2336 = vmatprep.subr.mxu1 %v878_v8 }
 0x13c   : > { %472 = vperm.xlu1 %2510, %v3023_v31   ;;  %2352 = vmatpush3.msra.mxu1 %v878_v8 }
 0x13d   : > { %985 = vmatprep.mubr.f32.mxu0 %v561_v2  ;;  %2337 = vmatprep.subr.mxu1 %v877_v13 }
 0x13e   : > { %2222 = vmatprep.subr.mxu0 %v878_v8  ;;  %2353 = vmatpush3.msra.mxu1 %v877_v13 }
 0x13f   : > { %v428_v11 = vpop.permute.xlu1 %427  ;;  %2223 = vmatpush3.msra.mxu0 %v878_v8  ;;  %2338 = vmatprep.subr.mxu1 %v876_v16  ;;  %v3194_v8 = vld [vmem:[#allocation2 + $0x68] sm:$0xff] }
 0x140   : > { %v481_v6 = vmul.f32 %v428_v11, %v3129_v56  ;;  %2511 = vset.pattern.permute.xlu1 %v2742_v12  ;;  %v875_v12 = vld [vmem:[#allocation8 + $0x200] sm:$0xff]  ;;  %2224 = vmatprep.subr.mxu0 %v877_v13 }
 0x141   : > { %632 = vperm.xlu1 %2511, %v3023_v31   ;;  %v642_v31 = vmul.f32 %v3099_v19, %v3141_v3  ;;  %2354 = vmatpush3.msra.mxu1 %v876_v16 }
 0x142   : > { %986 = vmatmul.mubr.f32.gmra.mxu0 %v481_v6  ;;  %2339 = vmatprep.subr.mxu1 %v875_v12  ;;  %v568_v6 = vmul.f32 %v3081_v62, %v3194_v8  ;;  %v377_v62 = vld [vmem:[#allocation2 + $0x70] sm:$0xff] }
 0x143   : > { %990 = vmatprep.mubr.f32.mxu0 %v562_v9  ;;  %2225 = vmatpush3.msra.mxu0 %v877_v13 }
 0x144   : > { %v597_v15 = vpop.permute.xlu1 %596  ;;  %2226 = vmatprep.subr.mxu0 %v876_v16  ;;  %2355 = vmatpush3.msra.mxu1 %v875_v12 }
 0x145   : > { %v641_v59 = vmul.f32 %v597_v15, %v3129_v56  ;;  %2513 = vset.pattern.permute.xlu1 %v2744_v32  ;;  %v438_v32 = vpop.permute.xlu0 %437  ;;  %2227 = vmatpush3.msra.mxu0 %v876_v16 }
 0x146   : > { %764 = vperm.xlu1 %2513, %v2997_v26   ;;  %2228 = vmatprep.subr.mxu0 %v875_v12  ;;  %v483_v27 = vmul.f32 %v438_v32, %v3157_v24 }
 0x147   : > { %1131 = vmatmul.mubr.f32.gmra.mxu1 %v641_v59  ;;  %2229 = vmatpush3.msra.mxu0 %v875_v12  ;;  %v648_v12 = vmul.f32 %v3110_v36, %v3194_v8  ;;  %v378_v36 = vld [vmem:[#allocation2 + $0x78] sm:$0xff] }
 0x149   : > { %v681_v17 = vpop.permute.xlu1 %680  ;;  %v453_v23 = vpop.permute.xlu0 %452 }
 0x14a   : > { %v722_v18 = vmul.f32 %v681_v17, %v3141_v3  ;;  %736 = vperm.xlu1 %2513, %v2926_v7   ;;  %v486_v49 = vmul.f32 %v453_v23, %v3184_v53 }
 0x14c   : > { %1135 = vmatprep.mubr.f32.mxu1 %v722_v18 }
 0x14d   : > { %1136 = vmatmul.mubr.f32.gmra.mxu1 %v642_v31  ;;  %v3162_v4 = vpop.permute.xlu0 %467 }
 0x14e   : > { %740 = vperm.xlu1 %2513, %v2946_v33   ;;  %v433_v26 = vpop.permute.xlu1 %432 }
 0x14f   : > { %v482_v19 = vmul.f32 %v433_v26, %v3141_v3 }
 0x151   : > { %991 = vmatmul.mubr.f32.gmra.mxu0 %v482_v19  ;;  %v689_v38 = vpop.permute.xlu0 %688  ;;  %v489_v19 = vmul.f32 %v3162_v4, %v377_v62 }
 0x152   : > { %744 = vperm.xlu1 %2513, %v2932_v14   ;;  %v724_v55 = vmul.f32 %v689_v38, %v3167_v40 }
 0x153   : > { %v525_v7 = vpop.permute.xlu1 %524 }
 0x154   : > { %v563_v30 = vmul.f32 %v525_v7, %v3157_v24 }
 0x155   : > { %v701_v28 = vpop.permute.xlu0 %700 }
 0x156   : > { %748 = vperm.xlu1 %2513, %v2949_v35   ;;  %995 = vmatprep.mubr.f32.mxu0 %v563_v30  ;;  %v727_v1 = vmul.f32 %v701_v28, %v3189_v63 }
 0x157   : > { %996 = vmatmul.mubr.f32.gmra.mxu0 %v483_v27 }
 0x158   : > { %v685_v33 = vpop.permute.xlu1 %684 }
 0x159   : > { %v723_v37 = vmul.f32 %v685_v33, %v3157_v24  ;;  %v713_v31 = vpop.permute.xlu0 %712 }
 0x15a   : > { %752 = vperm.xlu1 %2513, %v2987_v25   ;;  %v565_v25 = vmul.f32 %v3077_v60, %v3174_v44  ;;  %v730_v33 = vmul.f32 %v713_v31, %v378_v36 }
 0x15b   : > { %1140 = vmatprep.mubr.f32.mxu1 %v723_v37 }
 0x15d   : > { %v605_v14 = vpop.permute.xlu1 %604  ;;  %v733_v32 = vpop.permute.xlu0 %732 }
 0x15e   : > { %v643_v41 = vmul.f32 %v605_v14, %v3157_v24  ;;  %756 = vperm.xlu1 %2513, %v2937_v22  }
 0x160   : > { %1141 = vmatmul.mubr.f32.gmra.mxu1 %v643_v41 }
 0x161   : > { %1145 = vmatprep.mubr.f32.mxu1 %v724_v55  ;;  %v769_v27 = vpop.permute.xlu0 %768 }
 0x162   : > { %760 = vperm.xlu1 %2513, %v2955_v42   ;;  %v529_v35 = vpop.permute.xlu1 %528  ;;  %v645_v42 = vmul.f32 %v3105_v29, %v3174_v44 }
 0x163   : > { %v564_v43 = vmul.f32 %v529_v35, %v3167_v40 }
 0x165   : > { %1000 = vmatprep.mubr.f32.mxu0 %v564_v43  ;;  %v773_v14 = vpop.permute.xlu0 %772  ;;  %v795_v43 = vmul.f32 %v733_v32, %v3046_v34 }
 0x167   : > { %v443_v45 = vpop.permute.xlu1 %442 }
 0x168   : > { %v484_v47 = vmul.f32 %v443_v45, %v3167_v40 }
 0x169   : > { %v777_v35 = vpop.permute.xlu0 %776 }
 0x16a   : > { %1001 = vmatmul.mubr.f32.gmra.mxu0 %v484_v47 }
 0x16b   : > { %1005 = vmatprep.mubr.f32.mxu0 %v565_v25 }
 0x16c   : > { %v609_v48 = vpop.permute.xlu1 %608 }
 0x16d   : > { %v644_v22 = vmul.f32 %v609_v48, %v3167_v40  ;;  %v781_v45 = vpop.permute.xlu0 %780 }
 0x16f   : > { %1146 = vmatmul.mubr.f32.gmra.mxu1 %v644_v22 }
 0x171   : > { %v693_v51 = vpop.permute.xlu1 %692  ;;  %v785_v22 = vpop.permute.xlu0 %784 }
 0x172   : > { %v725_v5 = vmul.f32 %v693_v51, %v3174_v44 }
 0x174   : > { %1150 = vmatprep.mubr.f32.mxu1 %v725_v5 }
 0x175   : > { %1151 = vmatmul.mubr.f32.gmra.mxu1 %v645_v42  ;;  %v804_v42 = vmul.f32 %v769_v27, %v3167_v40  ;;  %v789_v34 = vpop.permute.xlu0 %788 }
 0x176   : > { %v448_v52 = vpop.permute.xlu1 %447 }
 0x177   : > { %v485_v60 = vmul.f32 %v448_v52, %v3174_v44  ;;  %v805_v52 = vmul.f32 %v773_v14, %v3174_v44  ;;  %v809_v44 = vmul.f32 %v789_v34, %v377_v62 }
 0x179   : > { %1006 = vmatmul.mubr.f32.gmra.mxu0 %v485_v60 }
 0x17b   : > { %v537_v57 = vpop.permute.xlu1 %536 }
 0x17c   : > { %v566_v58 = vmul.f32 %v537_v57, %v3184_v53  ;;  %v806_v57 = vmul.f32 %v777_v35, %v3184_v53 }
 0x17e   : > { %1010 = vmatprep.mubr.f32.mxu0 %v566_v58  ;;  %v807_v58 = vmul.f32 %v781_v45, %v3189_v63 }
 0x17f   : > { %1011 = vmatmul.mubr.f32.gmra.mxu0 %v486_v49 }
 0x180   : > { %v697_v61 = vpop.permute.xlu1 %696 }
 0x181   : > { %v726_v29 = vmul.f32 %v697_v61, %v3184_v53 }
 0x183   : > { %1155 = vmatprep.mubr.f32.mxu1 %v726_v29  ;;  %v793_v29 = vpop.permute.xlu0 %792 }
 0x185   : > { %v617_v0 = vpop.permute.xlu1 %616 }
 0x186   : > { %v646_v46 = vmul.f32 %v617_v0, %v3184_v53  ;;  %v810_v0 = vmul.f32 %v793_v29, %v378_v36 }
 0x188   : > { %1156 = vmatmul.mubr.f32.gmra.mxu1 %v646_v46 }
 0x189   : > { %1160 = vmatprep.mubr.f32.mxu1 %v727_v1 }
 0x18a   : > { %v541_v2 = vpop.permute.xlu1 %540 }
 0x18b   : > { %v567_v21 = vmul.f32 %v541_v2, %v3189_v63 }
 0x18d   : > { %1015 = vmatprep.mubr.f32.mxu0 %v567_v21 }
 0x18f   : > { %v458_v9 = vpop.permute.xlu1 %457 }
 0x190   : > { %v487_v11 = vmul.f32 %v458_v9, %v3189_v63 }
 0x192   : > { %1016 = vmatmul.mubr.f32.gmra.mxu0 %v487_v11 }
 0x193   : > { %1020 = vmatprep.mubr.f32.mxu0 %v568_v6 }
 0x194   : > { %v621_v13 = vpop.permute.xlu1 %620 }
 0x195   : > { %v647_v15 = vmul.f32 %v621_v13, %v3189_v63 }
 0x197   : > { %1161 = vmatmul.mubr.f32.gmra.mxu1 %v647_v15 }
 0x199   : > { %v705_v59 = vpop.permute.xlu1 %704 }
 0x19a   : > { %v728_v16 = vmul.f32 %v705_v59, %v3194_v8 }
 0x19c   : > { %1165 = vmatprep.mubr.f32.mxu1 %v728_v16 }
 0x19d   : > { %1166 = vmatmul.mubr.f32.gmra.mxu1 %v648_v12 }
 0x19e   : > { %v463_v17 = vpop.permute.xlu1 %462 }
 0x19f   : > { %v488_v18 = vmul.f32 %v463_v17, %v3194_v8 }
 0x1a1   : > { %1021 = vmatmul.mubr.f32.gmra.mxu0 %v488_v18 }
 0x1a3   : > { %v549_v26 = vpop.permute.xlu1 %548 }
 0x1a4   : > { %v569_v23 = vmul.f32 %v549_v26, %v377_v62 }
 0x1a6   : > { %1025 = vmatprep.mubr.f32.mxu0 %v569_v23 }
 0x1a7   : > { %1026 = vmatmul.mubr.f32.gmra.mxu0 %v489_v19 }
 0x1a8   : > { %v709_v7 = vpop.permute.xlu1 %708 }
 0x1a9   : > { %v729_v30 = vmul.f32 %v709_v7, %v377_v62 }
 0x1ab   : > { %1170 = vmatprep.mubr.f32.mxu1 %v729_v30 }
 0x1ad   : > { %v629_v37 = vpop.permute.xlu1 %628 }
 0x1ae   : > { %v649_v38 = vmul.f32 %v629_v37, %v377_v62 }
 0x1b0   : > { %1171 = vmatmul.mubr.f32.gmra.mxu1 %v649_v38 }
 0x1b1   : > { %1175 = vmatprep.mubr.f32.mxu1 %v730_v33 }
 0x1b2   : > { %v553_v55 = vpop.permute.xlu1 %552 }
 0x1b3   : > { %v570_v41 = vmul.f32 %v553_v55, %v378_v36 }
 0x1b5   : > { %1030 = vmatprep.mubr.f32.mxu0 %v570_v41 }
 0x1b7   : > { %v473_v4 = vpop.permute.xlu1 %472 }
 0x1b8   : > { %v490_v25 = vmul.f32 %v473_v4, %v378_v36 }
 0x1ba   : > { %1031 = vmatmul.mubr.f32.gmra.mxu0 %v490_v25 }
 0x1bb   : > { %2230 = vmatprep.mubr.f32.mxu0 %v795_v43 }
 0x1bc   : > { %v633_v47 = vpop.permute.xlu1 %632 }
 0x1bd   : > { %v650_v48 = vmul.f32 %v633_v47, %v378_v36 }
 0x1bf   : > { %1176 = vmatmul.mubr.f32.gmra.mxu1 %v650_v48 }
 0x1c1   : > { %v765_v51 = vpop.permute.xlu1 %764 }
 0x1c2   : > { %v803_v5 = vmul.f32 %v765_v51, %v3157_v24  ;;  %v808_v24 = vmul.f32 %v785_v22, %v3194_v8 }
 0x1c4   : > { %2242 = vmatprep.mubr.f32.mxu1 %v803_v5  ;;  %v3221_v9 = vpop.f32.mrf.mxu0 }
 0x1c5   : > { %v737_v60 = vpop.permute.xlu1 %736  ;;  %2243 = vmatmul.mubr.f32.vlgmr.msra.gmra.mxu1 %v804_v42 }
 0x1c6   : > { %v796_v49 = vmul.f32 %v737_v60, %v3050_v39  ;;  %2245 = vmatprep.mubr.f32.mxu1 %v805_v52 }
 0x1c8   : > { %2231 = vmatmul.mubr.f32.vlgmr.msra.gmra.mxu0 %v796_v49 }
 0x1c9   : > { %v741_v61 = vpop.permute.xlu1 %740  ;;  %2246 = vmatmul.mubr.f32.gmra.mxu1 %v806_v57 }
 0x1ca   : > { %v797_v40 = vmul.f32 %v741_v61, %v3065_v54  ;;  %2248 = vmatprep.mubr.f32.mxu1 %v807_v58 }
 0x1cc   : > { %2233 = vmatprep.mubr.f32.mxu0 %v797_v40 }
 0x1cd   : > { %v745_v28 = vpop.permute.xlu1 %744  ;;  %2249 = vmatmul.mubr.f32.gmra.mxu1 %v808_v24 }
 0x1ce   : > { %v798_v39 = vmul.f32 %v745_v28, %v3091_v10  ;;  %2251 = vmatprep.mubr.f32.mxu1 %v809_v44  ;;  %v3219_v10 = vpop.f32.mrf.mxu1 }
 0x1d0   : > { %2234 = vmatmul.mubr.f32.gmra.mxu0 %v798_v39  ;;  %v3223_v11 = vpop.f32.mrf.mxu1 }
 0x1d1   : > { %v749_v53 = vpop.permute.xlu1 %748  ;;  %2252 = vmatmul.mubr.f32.gmra.mxu1 %v810_v0 }
 0x1d2   : > { %v799_v63 = vmul.f32 %v749_v53, %v3102_v20  ;;  %v3225_v20 = vpop.f32.mrf.mxu0 }
 0x1d4   : > { %2236 = vmatprep.mubr.f32.mxu0 %v799_v63  ;;  %v3227_v13 = vpop.f32.mrf.mxu0 }
 0x1d5   : > { %v753_v1 = vpop.permute.xlu1 %752 }
 0x1d6   : > { %v800_v54 = vmul.f32 %v753_v1, %v3123_v50  ;;  %v3229_v15 = vpop.f32.mrf.mxu0 }
 0x1d8   : > { %2237 = vmatmul.mubr.f32.gmra.mxu0 %v800_v54  ;;  %v2085_v6 = vpop.f32.mrf.mxu1 }
 0x1d9   : > { %v757_v46 = vpop.permute.xlu1 %756 }
 0x1da   : > { %v801_v2 = vmul.f32 %v757_v46, %v3129_v56  ;;  %v2086_v50 = vpop.f32.mrf.mxu1 }
 0x1dc   : > { %2239 = vmatprep.mubr.f32.mxu0 %v801_v2  ;;  %v3231_v56 = vpop.f32.mrf.mxu1 }
 0x1dd   : > { %v761_v21 = vpop.permute.xlu1 %760 }
 0x1de   : > { %v802_v8 = vmul.f32 %v761_v21, %v3141_v3  ;;  %v3235_v3 = vpop.f32.mrf.mxu1 }
 0x1e0   : > { %2240 = vmatmul.mubr.f32.gmra.mxu0 %v802_v8  ;;  %v3239_v12 = vpop.f32.mrf.mxu1 }
 0x1e2   : > { %v3243_v17 = vpop.f32.mrf.mxu1 }
 0x1e5   : > { %v3247_v62 = vpop.f32.mrf.mxu1 }
 0x1e6   : > { %3381 = vst [vmem:[#allocation19_spill] sm:$0xff] %v3247_v62 }
 0x1e7   : > { %v3251_v26 = vpop.f32.mrf.mxu1 }
 0x1e8   : > { %3383 = vst [vmem:[#allocation21_spill] sm:$0xff] %v3251_v26 }
 0x1ed   : > { %v3233_v59 = vpop.f32.mrf.mxu0 }
 0x1ef   : > { %v3237_v16 = vpop.f32.mrf.mxu0 }
 0x1f1   : > { %v3241_v31 = vpop.f32.mrf.mxu0 }
 0x1f3   : > { %v3245_v18 = vpop.f32.mrf.mxu0 }
 0x1f5   : > { %v3249_v32 = vpop.f32.mrf.mxu0 }
 0x1f6   : > { %3382 = vst [vmem:[#allocation20_spill] sm:$0xff] %v3249_v32 }
 0x1f7   : > { %v3253_v23 = vpop.f32.mrf.mxu0 }
 0x1f8   : > { %3384 = vst [vmem:[#allocation22_spill] sm:$0xff] %v3253_v23  ;;  %v3255_v19 = vpop.f32.mrf.mxu1  ;;  %v2007_v23 = vadd.f32 %v3229_v15, %v3227_v13 }
 0x1f9   : > { %v3257_v7 = vpop.f32.mrf.mxu0 }
 0x1fa   : > { %v3259_v27 = vpop.f32.mrf.mxu1 }
 0x1fb   : > { %v3263_v36 = vpop.f32.mrf.mxu0 }
 0x202   : > { %v3265_v33 = vpop.f32.mrf.mxu0 }
 0x203   : > { %3386 = vst [vmem:[#allocation24_spill] sm:$0xff] %v3265_v33 }
 0x204   : > { %v3271_v14 = vpop.f32.mrf.mxu0 }
 0x205   : > { %3389 = vst [vmem:[#allocation27_spill] sm:$0xff] %v3271_v14 }
 0x207   : > { %v3261_v30 = vpop.f32.mrf.mxu1 }
 0x208   : > { %3385 = vst [vmem:[#allocation23_spill] sm:$0xff] %v3261_v30 }
 0x209   : > { %v3267_v37 = vpop.f32.mrf.mxu1 }
 0x20a   : > { %3387 = vst [vmem:[#allocation25_spill] sm:$0xff] %v3267_v37  ;;  %v2087_v37 = vadd.f32 %v2086_v50, %v2085_v6 }
 0x20c   : > { %v1108_v50 = vadd.f32 %v2087_v37, %v2007_v23 }
 0x20d   : > { %v3269_v38 = vpop.f32.mrf.mxu1 }
 0x20e   : > { %3388 = vst [vmem:[#allocation26_spill] sm:$0xff] %v3269_v38 }
 0x20f   : > { %v3275_v41 = vpop.f32.mrf.mxu1 }
 0x210   : > { %3391 = vst [vmem:[#allocation29_spill] sm:$0xff] %v3275_v41 }
 0x211   : > { %v3273_v55 = vpop.f32.mrf.mxu0 }
 0x212   : > { %3390 = vst [vmem:[#allocation28_spill] sm:$0xff] %v3273_v55  ;;  %v2004_v55 = vadd.f32 %v3225_v20, %v3221_v9 }
 0x213   : > { %v3277_v43 = vpop.f32.mrf.mxu0 }
 0x214   : > { %3392 = vst [vmem:[#allocation30_spill] sm:$0xff] %v3277_v43 }
 0x217   : > { %v2026_v4 = vpop.f32.mrf.mxu0 }
 0x219   : > { %v2027_v47 = vpop.f32.mrf.mxu0 }
 0x21a   : > { %v2028_v21 = vadd.f32 %v2027_v47, %v2026_v4 }
 0x220   : > { %v2106_v35 = vpop.f32.mrf.mxu1 }
 0x222   : > { %v2107_v25 = vpop.f32.mrf.mxu1 }
 0x223   : > { %v2108_v8 = vadd.f32 %v2107_v25, %v2106_v35  ;;  %v2084_v35 = vadd.f32 %v3223_v11, %v3219_v10 }
 0x225   : > { %v1143_v4 = vadd.f32 %v2108_v8, %v2028_v21  ;;  %v3397_v8 = vld [vmem:[#allocation28_spill] sm:$0xff] }
 0x22a   : > { %v2029_v48 = vpop.f32.mrf.mxu0 }
 0x22c   : > { %v2030_v51 = vpop.f32.mrf.mxu0 }
 0x22d   : > { %v2031_v14 = vadd.f32 %v2030_v51, %v2029_v48  ;;  %v1103_v51 = vadd.f32 %v2084_v35, %v2004_v55  ;;  %v2093_v55 = vadd.f32 %v3243_v17, %v3239_v12 }
 0x22f   : > { %v2109_v45 = vpop.f32.mrf.mxu1 }
 0x231   : > { %v2110_v22 = vpop.f32.mrf.mxu1 }
 0x232   : > { %v2111_v46 = vadd.f32 %v2110_v22, %v2109_v45 }
 0x234   : > { %v1148_v43 = vadd.f32 %v2111_v46, %v2031_v14 }
 0x235   : > { %v2112_v42 = vpop.f32.mrf.mxu1 }
 0x237   : > { %v2113_v52 = vpop.f32.mrf.mxu1 }
 0x238   : > { %v2114_v62 = vadd.f32 %v2113_v52, %v2112_v42 }
 0x239   : > { %v2032_v5 = vpop.f32.mrf.mxu0 }
 0x23b   : > { %v2033_v34 = vpop.f32.mrf.mxu0 }
 0x23c   : > { %v2034_v26 = vadd.f32 %v2033_v34, %v2032_v5  ;;  %v2090_v34 = vadd.f32 %v3235_v3, %v3231_v56  ;;  %v2019_v56 = vadd.f32 %v3263_v36, %v3257_v7  ;;  %v3398_v7 = vld [vmem:[#allocation30_spill] sm:$0xff] }
 0x23d   : > { %v2025_v36 = vadd.f32 %v3398_v7, %v3397_v8 }
 0x23f   : > { %v2035_v49 = vpop.f32.mrf.mxu0 }
 0x241   : > { %v2036_v61 = vpop.f32.mrf.mxu0 }
 0x242   : > { %v2037_v41 = vadd.f32 %v2036_v61, %v2035_v49 }
 0x248   : > { %v2115_v60 = vpop.f32.mrf.mxu1 }
 0x24a   : > { %v2116_v57 = vpop.f32.mrf.mxu1 }
 0x24b   : > { %v2117_v38 = vadd.f32 %v2116_v57, %v2115_v60 }
 0x24d   : > { %v1158_v48 = vadd.f32 %v2117_v38, %v2037_v41  ;;  %v2010_v41 = vadd.f32 %v3237_v16, %v3233_v59 }
 0x24f   : > { %v1113_v59 = vadd.f32 %v2090_v34, %v2010_v41 }
 0x252   : > { %v2038_v40 = vpop.f32.mrf.mxu0 }
 0x254   : > { %v2039_v29 = vpop.f32.mrf.mxu0 }
 0x255   : > { %v2040_v23 = vadd.f32 %v2039_v29, %v2038_v40 }
 0x257   : > { %v2118_v58 = vpop.f32.mrf.mxu1 }
 0x259   : > { %v2119_v24 = vpop.f32.mrf.mxu1 }
 0x25a   : > { %v2120_v13 = vadd.f32 %v2119_v24, %v2118_v58 }
 0x25d   : > { %v2121_v44 = vpop.f32.mrf.mxu1 }
 0x25f   : > { %v2122_v39 = vpop.f32.mrf.mxu1 }
 0x260   : > { %v2123_v15 = vadd.f32 %v2122_v39, %v2121_v44  ;;  %v2099_v44 = vadd.f32 %v3259_v27, %v3255_v19  ;;  %v3393_v39 = vld [vmem:[#allocation19_spill] sm:$0xff] }
 0x261   : > { %v2041_v28 = vpop.f32.mrf.mxu0 }
 0x262   : > { %v1128_v46 = vadd.f32 %v2099_v44, %v2019_v56 }
 0x263   : > { %v2042_v53 = vpop.f32.mrf.mxu0 }
 0x264   : > { %v2043_v25 = vadd.f32 %v2042_v53, %v2041_v28 }
 0x266   : > { %v1168_v38 = vadd.f32 %v2123_v15, %v2043_v25 }
 0x267   : > { %v2044_v63 = vpop.f32.mrf.mxu0 }
 0x269   : > { %v2045_v2 = vpop.f32.mrf.mxu0 }
 0x26a   : > { %v2046_v57 = vadd.f32 %v2045_v2, %v2044_v63  ;;  %v3395_v63 = vld [vmem:[#allocation20_spill] sm:$0xff] }
 0x270   : > { %v2124_v0 = vpop.f32.mrf.mxu1 }
 0x272   : > { %v2125_v1 = vpop.f32.mrf.mxu1 }
 0x27a   : > { %v2047_v33 = vpop.f32.mrf.mxu0 }
 0x27c   : > { %v2048_v45 = vpop.f32.mrf.mxu0 }
 0x27f   : > { %v2127_v54 = vpop.f32.mrf.mxu1 }
 0x281   : > { %v2128_v30 = vpop.f32.mrf.mxu1 }
 0x282   : > { %v2129_v37 = vadd.f32 %v2128_v30, %v2127_v54 }
 0x285   : > { %v2244_v32 = vpop.f32.mrf.mxu1 }
 0x286   : > { %v1293_v22 = vadd.f32 %v2244_v32, %v1148_v43  ;;  %v1153_v32 = vadd.f32 %v2114_v62, %v2034_v26  ;;  %v2013_v43 = vadd.f32 %v3245_v18, %v3241_v31  ;;  %v2126_v62 = vadd.f32 %v2125_v1, %v2124_v0  ;;  %v3394_v0 = vld [vmem:[#allocation21_spill] sm:$0xff]  ;;  %v3396_v1 = vld [vmem:[#allocation22_spill] sm:$0xff] }
 0x287   : > { %v1287_v6 = vpop.f32.mrf.mxu1  ;;  %v2049_v26 = vadd.f32 %v2048_v45, %v2047_v33  ;;  %v1163_v18 = vadd.f32 %v2120_v13, %v2040_v23  ;;  %v2096_v53 = vadd.f32 %v3394_v0, %v3393_v39  ;;  %v2016_v54 = vadd.f32 %v3396_v1, %v3395_v63  ;;  %v3399_v45 = vld [vmem:[#allocation26_spill] sm:$0xff] }
 0x288   : > { %1335 = vst [vmem:[#allocation3 + $0x48] sm:$0xff] %v1293_v22  ;;  %v1288_v14 = vadd.f32 %v1287_v6, %v1143_v4  ;;  %v2232_v47 = vpop.f32.mrf.mxu0  ;;  %v1118_v49 = vadd.f32 %v2093_v55, %v2013_v43  ;;  %v1173_v33 = vadd.f32 %v2126_v62, %v2046_v57  ;;  %v3400_v22 = vld [vmem:[#allocation29_spill] sm:$0xff]  ;;  %v3401_v6 = vld [vmem:[#allocation23_spill] sm:$0xff] }
 0x289   : > { %v1253_v9 = vadd.f32 %v2232_v47, %v1108_v50  ;;  %v2247_v20 = vpop.f32.mrf.mxu1  ;;  %v1178_v12 = vadd.f32 %v2129_v37, %v2049_v26  ;;  %v1123_v19 = vadd.f32 %v2096_v53, %v2016_v54  ;;  %v2105_v4 = vadd.f32 %v3400_v22, %v3399_v45  ;;  %v3402_v50 = vld [vmem:[#allocation25_spill] sm:$0xff]  ;;  %v3404_v47 = vld [vmem:[#allocation27_spill] sm:$0xff] }
 0x28a   : > { %1334 = vst [vmem:[#allocation3 + $0x40] sm:$0xff] %v1288_v14  ;;  %v1303_v42 = vadd.f32 %v2247_v20, %v1158_v48  ;;  %v1247_v5 = vpop.f32.mrf.mxu0  ;;  %v2102_v25 = vadd.f32 %v3402_v50, %v3401_v6  ;;  %v3403_v14 = vld [vmem:[#allocation24_spill] sm:$0xff] }
 0x28b   : > { %1327 = vst [vmem:[#allocation3 + $0x8] sm:$0xff] %v1253_v9  ;;  %v1248_v10 = vadd.f32 %v1247_v5, %v1103_v51  ;;  %v1297_v11 = vpop.f32.mrf.mxu1  ;;  %v2022_v48 = vadd.f32 %v3404_v47, %v3403_v14  ;;  %v1138_v9 = vadd.f32 %v2105_v4, %v2025_v36 }
 0x28c   : > { %1337 = vst [vmem:[#allocation3 + $0x58] sm:$0xff] %v1303_v42  ;;  %v1298_v52 = vadd.f32 %v1297_v11, %v1153_v32 }
 0x28d   : > { %1326 = vst [vmem:[#allocation3] sm:$0xff] %v1248_v10  ;;  %v2250_v60 = vpop.f32.mrf.mxu1  ;;  %v1133_v13 = vadd.f32 %v2102_v25, %v2022_v48 }
 0x28e   : > { %1336 = vst [vmem:[#allocation3 + $0x50] sm:$0xff] %v1298_v52  ;;  %v1313_v31 = vadd.f32 %v2250_v60, %v1168_v38 }
 0x28f   : > { %v1307_v30 = vpop.f32.mrf.mxu1 }
 0x290   : > { %1339 = vst [vmem:[#allocation3 + $0x68] sm:$0xff] %v1313_v31  ;;  %v1308_v58 = vadd.f32 %v1307_v30, %v1163_v18  ;;  %v2235_v61 = vpop.f32.mrf.mxu0 }
 0x291   : > { %v1263_v17 = vadd.f32 %v2235_v61, %v1118_v49  ;;  %v2253_v40 = vpop.f32.mrf.mxu1 }
 0x292   : > { %1338 = vst [vmem:[#allocation3 + $0x60] sm:$0xff] %v1308_v58  ;;  %v1323_v16 = vadd.f32 %v2253_v40, %v1178_v12  ;;  %v1257_v24 = vpop.f32.mrf.mxu0 }
 0x293   : > { %1329 = vst [vmem:[#allocation3 + $0x18] sm:$0xff] %v1263_v17  ;;  %v1258_v3 = vadd.f32 %v1257_v24, %v1113_v59  ;;  %v1317_v29 = vpop.f32.mrf.mxu1 }
 0x294   : > { %1341 = vst [vmem:[#allocation3 + $0x78] sm:$0xff] %v1323_v16  ;;  %v1318_v28 = vadd.f32 %v1317_v29, %v1173_v33 }
 0x295   : > { %1328 = vst [vmem:[#allocation3 + $0x10] sm:$0xff] %v1258_v3 }
 0x296   : > { %1340 = vst [vmem:[#allocation3 + $0x70] sm:$0xff] %v1318_v28 }
 0x298   : > { %v2238_v2 = vpop.f32.mrf.mxu0 }
 0x299   : > { %v1273_v21 = vadd.f32 %v2238_v2, %v1128_v46 }
 0x29a   : > { %v1267_v27 = vpop.f32.mrf.mxu0 }
 0x29b   : > { %1331 = vst [vmem:[#allocation3 + $0x28] sm:$0xff] %v1273_v21  ;;  %v1268_v35 = vadd.f32 %v1267_v27, %v1123_v19 }
 0x29d   : > { %1330 = vst [vmem:[#allocation3 + $0x20] sm:$0xff] %v1268_v35 }
 0x2a0   : > { %v2241_v20 = vpop.f32.mrf.mxu0 }
 0x2a1   : > { %v1283_v51 = vadd.f32 %v2241_v20, %v1138_v9 }
 0x2a2   : > { %v1277_v15 = vpop.f32.mrf.mxu0 }
 0x2a3   : > { %1333 = vst [vmem:[#allocation3 + $0x38] sm:$0xff] %v1283_v51  ;;  %v1278_v42 = vadd.f32 %v1277_v15, %v1133_v13 }
 0x2a5   : > { %1332 = vst [vmem:[#allocation3 + $0x30] sm:$0xff] %v1278_v42 }
 0x2a6 LB: >> { %s1348_s27 = sadd.s32 %s2728_s15, %s1959_s29  ;;  %s1352_s30 = scalar_lea.vmem [#allocation3], %s2728_s15  ;;  %s2728_s15 = sphi %s2726_s15, %s1347_s15  }
 0x2a7   : >> { %s1349_s26 = sld [smem:[#allocation7 + %s1348_s27]]  ;;  %s1347_s15 = sadd.s32 1, %s2728_s15  }
 0x2a8   : >> { %p1344_p8 = scmp.ge.s32.totalorder %s1347_s15, 128  }
 0x2a9   : > { %p1961_p9 = scmp.ne.s32.totalorder (%p1344_p8), %s2704_s1, 1 }
 0x2ac   : >> { %v1353_v5 = vld [vmem:[%s1352_s30] sm:$0x1] }
 0x2ad   : >> { %s1350_s16 = scalar_lea.vmem [#allocation4], %s1349_s26  ;;  %1346 = sbr.rel (!%p1344_p8) target bundleno = 678 (0x2a6), region = 129 }
 0x2ae   : >> { %v1351_v32 = vld [vmem:[%s1350_s16] sm:$0x1] }
 0x2af   : >> { %v1354_v43 = vadd.f32 %v1353_v5, %v1351_v32 }
 0x2b1   : >> { %1355 = vst [vmem:[%s1350_s16] sm:$0x1] %v1354_v43 }
 0x2b2   : > { %1359 = sbr.rel (%p1961_p9) target bundleno = 1016 (0x3f8), region = 86 }
 0x2b7   : > { %v1410_v10 = vld [vmem:[#allocation11 + $0x170] sm:$0xff]  ;;  %v1409_v11 = vld [vmem:[#allocation11 + $0x168] sm:$0xff]  ;;  %v1407_v23 = vld [vmem:[#allocation11 + $0x158] sm:$0xff]  ;;  %v2745_v52 = vmov 0.0  }
 0x2b8   : > { %1429 = vmatprep.subr.mxu0 %v1410_v10  ;;  %v1406_v37 = vld [vmem:[#allocation11 + $0x150] sm:$0xff]  ;;  %1493 = vmatprep.mubr.f32.mxu0 %v2745_v52  ;;  %v1404_v38 = vld [vmem:[#allocation11 + $0x140] sm:$0xff]  ;;  %v1403_v55 = vld [vmem:[#allocation11 + $0x138] sm:$0xff] }
 0x2b9   : > { %1430 = vmatpush1.msra.mxu0 %v1409_v11  ;;  %v1401_v41 = vld [vmem:[#allocation11 + $0x128] sm:$0xff]  ;;  %v1400_v60 = vld [vmem:[#allocation11 + $0x120] sm:$0xff]  ;;  %v1398_v62 = vld [vmem:[#allocation11 + $0x110] sm:$0xff] }
 0x2ba   : > { %1431 = vmatprep.subr.mxu0 %v1407_v23  ;;  %v1397_v26 = vld [vmem:[#allocation11 + $0x108] sm:$0xff]  ;;  %v1395_v31 = vld [vmem:[#allocation11 + $0xf8] sm:$0xff]  ;;  %v1394_v18 = vld [vmem:[#allocation11 + $0xf0] sm:$0xff] }
 0x2bb   : > { %1432 = vmatpush1.msra.mxu0 %v1406_v37  ;;  %v1392_v34 = vld [vmem:[#allocation11 + $0xe0] sm:$0xff]  ;;  %v3313_v30 = vld [vmem:[#allocation4] sm:$0xff]  ;;  %v1391_v49 = vld [vmem:[#allocation11 + $0xd8] sm:$0xff] }
 0x2bc   : > { %1433 = vmatprep.subr.mxu0 %v1404_v38  ;;  %v1411_v57 = vld [vmem:[#allocation11 + $0x178] sm:$0xff]  ;;  %2286 = vmatprep.mubr.f32.mxu1 %v3313_v30  ;;  %v1389_v58 = vld [vmem:[#allocation11 + $0xc8] sm:$0xff]  ;;  %v1408_v61 = vld [vmem:[#allocation11 + $0x160] sm:$0xff] }
 0x2bd   : > { %1434 = vmatpush1.msra.mxu0 %v1403_v55  ;;  %2254 = vmatprep.subr.mxu1 %v1411_v57  ;;  %v1388_v12 = vld [vmem:[#allocation11 + $0xc0] sm:$0xff]  ;;  %v1405_v17 = vld [vmem:[#allocation11 + $0x148] sm:$0xff]  ;;  %v1386_v40 = vld [vmem:[#allocation11 + $0xb0] sm:$0xff] }
 0x2be   : > { %1435 = vmatprep.subr.mxu0 %v1401_v41  ;;  %2255 = vmatpush3.msra.mxu1 %v1411_v57  ;;  %v1385_v59 = vld [vmem:[#allocation11 + $0xa8] sm:$0xff]  ;;  %v1402_v16 = vld [vmem:[#allocation11 + $0x130] sm:$0xff]  ;;  %v1383_v24 = vld [vmem:[#allocation11 + $0x98] sm:$0xff] }
 0x2bf   : > { %1436 = vmatpush1.msra.mxu0 %v1400_v60  ;;  %2256 = vmatprep.subr.mxu1 %v1408_v61  ;;  %v1382_v33 = vld [vmem:[#allocation11 + $0x90] sm:$0xff]  ;;  %v1399_v44 = vld [vmem:[#allocation11 + $0x118] sm:$0xff]  ;;  %v1380_v56 = vld [vmem:[#allocation11 + $0x80] sm:$0xff] }
 0x2c0   : > { %1437 = vmatprep.subr.mxu0 %v1398_v62  ;;  %2257 = vmatpush3.msra.mxu1 %v1408_v61  ;;  %v1379_v3 = vld [vmem:[#allocation11 + $0x78] sm:$0xff]  ;;  %v1396_v29 = vld [vmem:[#allocation11 + $0x100] sm:$0xff]  ;;  %v1377_v28 = vld [vmem:[#allocation11 + $0x68] sm:$0xff] }
 0x2c1   : > { %1438 = vmatpush1.msra.mxu0 %v1397_v26  ;;  %2258 = vmatprep.subr.mxu1 %v1405_v17  ;;  %v1376_v39 = vld [vmem:[#allocation11 + $0x60] sm:$0xff]  ;;  %v1393_v0 = vld [vmem:[#allocation11 + $0xe8] sm:$0xff]  ;;  %v1374_v53 = vld [vmem:[#allocation11 + $0x50] sm:$0xff] }
 0x2c2   : > { %1439 = vmatprep.subr.mxu0 %v1395_v31  ;;  %2259 = vmatpush3.msra.mxu1 %v1405_v17  ;;  %v1373_v63 = vld [vmem:[#allocation11 + $0x48] sm:$0xff]  ;;  %v1390_v1 = vld [vmem:[#allocation11 + $0xd0] sm:$0xff]  ;;  %v1371_v54 = vld [vmem:[#allocation11 + $0x38] sm:$0xff] }
 0x2c3   : > { %1440 = vmatpush1.msra.mxu0 %v1394_v18  ;;  %2260 = vmatprep.subr.mxu1 %v1402_v16  ;;  %v1370_v46 = vld [vmem:[#allocation11 + $0x30] sm:$0xff]  ;;  %v1387_v2 = vld [vmem:[#allocation11 + $0xb8] sm:$0xff]  ;;  %v1368_v21 = vld [vmem:[#allocation11 + $0x20] sm:$0xff] }
 0x2c4   : > { %1441 = vmatprep.subr.mxu0 %v1392_v34  ;;  %2261 = vmatpush3.msra.mxu1 %v1402_v16  ;;  %v1367_v19 = vld [vmem:[#allocation11 + $0x18] sm:$0xff]  ;;  %v1384_v27 = vld [vmem:[#allocation11 + $0xa0] sm:$0xff]  ;;  %v1365_v8 = vld [vmem:[#allocation11 + $0x8] sm:$0xff] }
 0x2c5   : > { %1442 = vmatpush1.msra.mxu0 %v1391_v49  ;;  %2262 = vmatprep.subr.mxu1 %v1399_v44  ;;  %v1364_v7 = vld [vmem:[#allocation11] sm:$0xff]  ;;  %v1381_v36 = vld [vmem:[#allocation11 + $0x88] sm:$0xff]  ;;  %v1627_v45 = vld [vmem:[#allocation13 + $0x170] sm:$0xff] }
 0x2c6   : > { %1443 = vmatprep.subr.mxu0 %v1389_v58  ;;  %2263 = vmatpush3.msra.mxu1 %v1399_v44  ;;  %v1626_v22 = vld [vmem:[#allocation13 + $0x168] sm:$0xff]  ;;  %v1624_v4 = vld [vmem:[#allocation13 + $0x158] sm:$0xff]  ;;  %v1378_v35 = vld [vmem:[#allocation11 + $0x70] sm:$0xff] }
 0x2c7   : > { %1444 = vmatpush1.msra.mxu0 %v1388_v12  ;;  %2264 = vmatprep.subr.mxu1 %v1396_v29  ;;  %v1623_v6 = vld [vmem:[#allocation13 + $0x150] sm:$0xff]  ;;  %v1621_v50 = vld [vmem:[#allocation13 + $0x140] sm:$0xff]  ;;  %v1375_v25 = vld [vmem:[#allocation11 + $0x58] sm:$0xff] }
 0x2c8   : > { %1445 = vmatprep.subr.mxu0 %v1386_v40  ;;  %2265 = vmatpush3.msra.mxu1 %v1396_v29  ;;  %v1620_v14 = vld [vmem:[#allocation13 + $0x138] sm:$0xff]  ;;  %v1618_v47 = vld [vmem:[#allocation13 + $0x128] sm:$0xff]  ;;  %v1617_v48 = vld [vmem:[#allocation13 + $0x120] sm:$0xff] }
 0x2c9   : > { %1446 = vmatpush1.msra.mxu0 %v1385_v59  ;;  %2266 = vmatprep.subr.mxu1 %v1393_v0  ;;  %v1372_v9 = vld [vmem:[#allocation11 + $0x40] sm:$0xff]  ;;  %v1615_v20 = vld [vmem:[#allocation13 + $0x110] sm:$0xff]  ;;  %v1363_v51 = vld [vmem:[#allocation4 + $0x8] sm:$0xff] }
 0x2ca   : > { %1447 = vmatprep.subr.mxu0 %v1383_v24  ;;  %2267 = vmatpush3.msra.mxu1 %v1393_v0  ;;  %v1614_v13 = vld [vmem:[#allocation13 + $0x108] sm:$0xff]  ;;  %v1612_v15 = vld [vmem:[#allocation13 + $0xf8] sm:$0xff]  ;;  %v1611_v5 = vld [vmem:[#allocation13 + $0xf0] sm:$0xff] }
 0x2cb   : > { %1448 = vmatpush1.msra.mxu0 %v1382_v33  ;;  %2268 = vmatprep.subr.mxu1 %v1390_v1  ;;  %v1369_v42 = vld [vmem:[#allocation11 + $0x28] sm:$0xff]  ;;  %v1609_v32 = vld [vmem:[#allocation13 + $0xe0] sm:$0xff]  ;;  %v1366_v43 = vld [vmem:[#allocation11 + $0x10] sm:$0xff] }
 0x2cc   : > { %1449 = vmatprep.subr.mxu0 %v1380_v56  ;;  %2269 = vmatpush3.msra.mxu1 %v1390_v1  ;;  %v1608_v10 = vld [vmem:[#allocation13 + $0xd8] sm:$0xff]  ;;  %v1606_v11 = vld [vmem:[#allocation13 + $0xc8] sm:$0xff]  ;;  %v1605_v23 = vld [vmem:[#allocation13 + $0xc0] sm:$0xff] }
 0x2cd   : > { %1450 = vmatpush1.msra.mxu0 %v1379_v3  ;;  %2270 = vmatprep.subr.mxu1 %v1387_v2  ;;  %v1628_v37 = vld [vmem:[#allocation13 + $0x178] sm:$0xff]  ;;  %v1603_v38 = vld [vmem:[#allocation13 + $0xb0] sm:$0xff]  ;;  %v1602_v55 = vld [vmem:[#allocation13 + $0xa8] sm:$0xff] }
 0x2ce   : > { %1451 = vmatprep.subr.mxu0 %v1377_v28  ;;  %2271 = vmatpush3.msra.mxu1 %v1387_v2  ;;  %v1600_v41 = vld [vmem:[#allocation13 + $0x98] sm:$0xff]  ;;  %v1625_v60 = vld [vmem:[#allocation13 + $0x160] sm:$0xff]  ;;  %v1599_v62 = vld [vmem:[#allocation13 + $0x90] sm:$0xff] }
 0x2cf   : > { %1452 = vmatpush1.msra.mxu0 %v1376_v39  ;;  %2272 = vmatprep.subr.mxu1 %v1384_v27  ;;  %v1597_v26 = vld [vmem:[#allocation13 + $0x80] sm:$0xff]  ;;  %v1622_v31 = vld [vmem:[#allocation13 + $0x148] sm:$0xff]  ;;  %v1596_v18 = vld [vmem:[#allocation13 + $0x78] sm:$0xff] }
 0x2d0   : > { %1453 = vmatprep.subr.mxu0 %v1374_v53  ;;  %2273 = vmatpush3.msra.mxu1 %v1384_v27  ;;  %v1594_v34 = vld [vmem:[#allocation13 + $0x68] sm:$0xff]  ;;  %v1593_v49 = vld [vmem:[#allocation13 + $0x60] sm:$0xff]  ;;  %v1591_v57 = vld [vmem:[#allocation13 + $0x50] sm:$0xff] }
 0x2d1   : > { %1454 = vmatpush1.msra.mxu0 %v1373_v63  ;;  %2274 = vmatprep.subr.mxu1 %v1381_v36  ;;  %v1616_v58 = vld [vmem:[#allocation13 + $0x118] sm:$0xff]  ;;  %v1590_v61 = vld [vmem:[#allocation13 + $0x48] sm:$0xff]  ;;  %v1613_v17 = vld [vmem:[#allocation13 + $0x100] sm:$0xff] }
 0x2d2   : > { %1455 = vmatprep.subr.mxu0 %v1371_v54  ;;  %2275 = vmatpush3.msra.mxu1 %v1381_v36  ;;  %v1588_v12 = vld [vmem:[#allocation13 + $0x38] sm:$0xff]  ;;  %v1587_v40 = vld [vmem:[#allocation13 + $0x30] sm:$0xff]  ;;  %v1585_v59 = vld [vmem:[#allocation13 + $0x20] sm:$0xff] }
 0x2d3   : > { %1456 = vmatpush1.msra.mxu0 %v1370_v46  ;;  %2276 = vmatprep.subr.mxu1 %v1378_v35  ;;  %v1610_v16 = vld [vmem:[#allocation13 + $0xe8] sm:$0xff]  ;;  %v1584_v24 = vld [vmem:[#allocation13 + $0x18] sm:$0xff]  ;;  %v1607_v44 = vld [vmem:[#allocation13 + $0xd0] sm:$0xff]  ;;  %v1414_v46 = vlaneseq }
 0x2d4   : > { %1457 = vmatprep.subr.mxu0 %v1368_v21  ;;  %2277 = vmatpush3.msra.mxu1 %v1378_v35  ;;  %v1582_v33 = vld [vmem:[#allocation13 + $0x8] sm:$0xff]  ;;  %v1581_v56 = vld [vmem:[#allocation13] sm:$0xff]  ;;  %v1604_v29 = vld [vmem:[#allocation13 + $0xb8] sm:$0xff] }
 0x2d5   : > { %1458 = vmatpush1.msra.mxu0 %v1367_v19  ;;  %2278 = vmatprep.subr.mxu1 %v1375_v25  ;;  %v3319_v3 = vld [vmem:[#allocation14] sm:$0xff]  ;;  %v3323_v39 = vld [vmem:[#allocation14 + $0x8] sm:$0xff]  ;;  %v1595_v53 = vld [vmem:[#allocation13 + $0x70] sm:$0xff]  ;;  %v1415_v21 = vshrl.u32 %v1414_v46, 7 }
 0x2d6   : > { %1459 = vmatprep.subr.mxu0 %v1365_v8  ;;  %2279 = vmatpush3.msra.mxu1 %v1375_v25  ;;  %v1601_v28 = vld [vmem:[#allocation13 + $0xa0] sm:$0xff]  ;;  %v1598_v0 = vld [vmem:[#allocation13 + $0x88] sm:$0xff]  ;;  %v1592_v63 = vld [vmem:[#allocation13 + $0x58] sm:$0xff] }
 0x2d7   : > { %1460 = vmatpush1.msra.mxu0 %v1364_v7  ;;  %2280 = vmatprep.subr.mxu1 %v1372_v9  ;;  %v1589_v1 = vld [vmem:[#allocation13 + $0x40] sm:$0xff]  ;;  %v1583_v54 = vld [vmem:[#allocation13 + $0x10] sm:$0xff]  ;;  %v1416_v27 = vsub.s32 0, %v1415_v21  ;;  %v1420_v35 = vsub.s32 1, %v1415_v21 }
 0x2d8   : > { %1494 = vmatmul.mubr.f32.vlgmr.msra.gmra.mxu0 %v3313_v30  ;;  %1646 = vmatprep.subr.mxu0 %v1627_v45  ;;  %v1619_v30 = vld [vmem:[#allocation13 + $0x130] sm:$0xff] }
 0x2d9   : > { %1647 = vmatpush1.msra.mxu0 %v1626_v22  ;;  %1499 = vmatprep.mubr.f32.mxu0 %v2745_v52  ;;  %v1412_v8 = vld [vmem:[%s3374_s7] sm:$0x7] }
 0x2da   : > { %1648 = vmatprep.subr.mxu0 %v1624_v4  ;;  %2281 = vmatpush3.msra.mxu1 %v1372_v9  ;;  %v1629_v36 = vld [vmem:[%s3375_s8] sm:$0x7]  ;;  %v1417_v45 = vrot.slane %v1412_v8, %v1416_v27 }
 0x2db   : > { %1649 = vmatpush1.msra.mxu0 %v1623_v6  ;;  %2282 = vmatprep.subr.mxu1 %v1369_v42  ;;  %v1634_v22 = vrot.slane %v1629_v36, %v1416_v27 }
 0x2dc   : > { %1650 = vmatprep.subr.mxu0 %v1621_v50  ;;  %1500 = vmatmul.mubr.f32.gmra.mxu0 %v1363_v51 }
 0x2dd   : > { %1651 = vmatpush1.msra.mxu0 %v1620_v14  ;;  %2283 = vmatpush3.msra.mxu1 %v1369_v42  ;;  %v1638_v14 = vrot.slane %v1629_v36, %v1420_v35 }
 0x2de   : > { %1652 = vmatprep.subr.mxu0 %v1618_v47  ;;  %2284 = vmatprep.subr.mxu1 %v1366_v43 }
 0x2df   : > { %1653 = vmatpush1.msra.mxu0 %v1617_v48  ;;  %2285 = vmatpush3.msra.mxu1 %v1366_v43  ;;  %v1421_v48 = vrot.slane %v1412_v8, %v1420_v35 }
 0x2e0   : > { %1654 = vmatprep.subr.mxu0 %v1615_v20  ;;  %1710 = vmatprep.mubr.f32.mxu0 %v2745_v52 }
 0x2e1   : > { %1655 = vmatpush1.msra.mxu0 %v1614_v13  ;;  %2289 = vmatprep.subr.mxu1 %v1628_v37 }
 0x2e2   : > { %1656 = vmatprep.subr.mxu0 %v1612_v15  ;;  %2287 = vmatmul.mubr.f32.vlgmr.msra.gmra.mxu1 %v1363_v51 }
 0x2e3   : > { %1657 = vmatpush1.msra.mxu0 %v1611_v5  ;;  %2290 = vmatpush3.msra.mxu1 %v1628_v37 }
 0x2e4   : > { %1658 = vmatprep.subr.mxu0 %v1609_v32  ;;  %2291 = vmatprep.subr.mxu1 %v1625_v60 }
 0x2e5   : > { %1659 = vmatpush1.msra.mxu0 %v1608_v10  ;;  %2292 = vmatpush3.msra.mxu1 %v1625_v60 }
 0x2e6   : > { %1660 = vmatprep.subr.mxu0 %v1606_v11  ;;  %2293 = vmatprep.subr.mxu1 %v1622_v31 }
 0x2e7   : > { %1661 = vmatpush1.msra.mxu0 %v1605_v23  ;;  %2294 = vmatpush3.msra.mxu1 %v1622_v31 }
 0x2e8   : > { %1662 = vmatprep.subr.mxu0 %v1603_v38  ;;  %2295 = vmatprep.subr.mxu1 %v1619_v30 }
 0x2e9   : > { %1663 = vmatpush1.msra.mxu0 %v1602_v55  ;;  %2296 = vmatpush3.msra.mxu1 %v1619_v30 }
 0x2ea   : > { %1664 = vmatprep.subr.mxu0 %v1600_v41  ;;  %2297 = vmatprep.subr.mxu1 %v1616_v58 }
 0x2eb   : > { %1665 = vmatpush1.msra.mxu0 %v1599_v62  ;;  %2298 = vmatpush3.msra.mxu1 %v1616_v58 }
 0x2ec   : > { %1666 = vmatprep.subr.mxu0 %v1597_v26  ;;  %2299 = vmatprep.subr.mxu1 %v1613_v17 }
 0x2ed   : > { %1667 = vmatpush1.msra.mxu0 %v1596_v18  ;;  %2300 = vmatpush3.msra.mxu1 %v1613_v17 }
 0x2ee   : > { %1668 = vmatprep.subr.mxu0 %v1594_v34  ;;  %2301 = vmatprep.subr.mxu1 %v1610_v16 }
 0x2ef   : > { %1669 = vmatpush1.msra.mxu0 %v1593_v49  ;;  %2302 = vmatpush3.msra.mxu1 %v1610_v16  ;;  %v1424_v49 = vsub.s32 2, %v1415_v21 }
 0x2f0   : > { %1670 = vmatprep.subr.mxu0 %v1591_v57  ;;  %2303 = vmatprep.subr.mxu1 %v1607_v44 }
 0x2f1   : > { %1671 = vmatpush1.msra.mxu0 %v1590_v61  ;;  %2304 = vmatpush3.msra.mxu1 %v1607_v44  ;;  %v1642_v57 = vrot.slane %v1629_v36, %v1424_v49 }
 0x2f2   : > { %1672 = vmatprep.subr.mxu0 %v1588_v12  ;;  %2305 = vmatprep.subr.mxu1 %v1604_v29 }
 0x2f3   : > { %1673 = vmatpush1.msra.mxu0 %v1587_v40  ;;  %2306 = vmatpush3.msra.mxu1 %v1604_v29  ;;  %v1425_v40 = vrot.slane %v1412_v8, %v1424_v49 }
 0x2f4   : > { %1674 = vmatprep.subr.mxu0 %v1585_v59  ;;  %2307 = vmatprep.subr.mxu1 %v1601_v28 }
 0x2f5   : > { %1675 = vmatpush1.msra.mxu0 %v1584_v24  ;;  %2321 = vmatprep.mubr.f32.mxu1 %v3319_v3 }
 0x2f6   : > { %1676 = vmatprep.subr.mxu0 %v1582_v33  ;;  %2308 = vmatpush3.msra.mxu1 %v1601_v28 }
 0x2f7   : > { %1677 = vmatpush1.msra.mxu0 %v1581_v56  ;;  %2309 = vmatprep.subr.mxu1 %v1598_v0 }
 0x2f8   : > { %1711 = vmatmul.mubr.f32.vlgmr.msra.gmra.mxu0 %v3319_v3  ;;  %2310 = vmatpush3.msra.mxu1 %v1598_v0 }
 0x2f9   : > { %1716 = vmatprep.mubr.f32.mxu0 %v2745_v52  ;;  %2311 = vmatprep.subr.mxu1 %v1595_v53  ;;  %v1586_v52 = vld [vmem:[#allocation13 + $0x28] sm:$0xff] }
 0x2fa   : > { %2312 = vmatpush3.msra.mxu1 %v1595_v53 }
 0x2fb   : > { %2313 = vmatprep.subr.mxu1 %v1592_v63 }
 0x2fc   : > { %1717 = vmatmul.mubr.f32.gmra.mxu0 %v3323_v39  ;;  %2314 = vmatpush3.msra.mxu1 %v1592_v63 }
 0x2fd   : > { %2315 = vmatprep.subr.mxu1 %v1589_v1 }
 0x2fe   : > { %2316 = vmatpush3.msra.mxu1 %v1589_v1 }
 0x2ff   : > { %2317 = vmatprep.subr.mxu1 %v1586_v52 }
 0x300   : > { %2318 = vmatpush3.msra.mxu1 %v1586_v52 }
 0x301   : > { %2319 = vmatprep.subr.mxu1 %v1583_v54 }
 0x302   : > { %2320 = vmatpush3.msra.mxu1 %v1583_v54 }
 0x303   : > { %2322 = vmatmul.mubr.f32.vlgmr.msra.gmra.mxu1 %v3323_v39 }
 0x398   : > { %v1495_v2 = vpop.f32.mrf.mxu0 }
 0x399   : > { %v1496_v50 = vadd.f32 %v1495_v2, %v1417_v45 }
 0x39a   : > { %v1497_v19 = vpop.f32.mrf.mxu0 }
 0x39b   : > { %v1498_v32 = vadd.f32 %v1497_v19, %v1421_v48 }
 0x39c   : > { %v1501_v7 = vpop.f32.mrf.mxu0 }
 0x39d   : > { %v1502_v51 = vadd.f32 %v1501_v7, %v1417_v45 }
 0x39e   : > { %v1503_v4 = vpop.f32.mrf.mxu0 }
 0x39f   : > { %v1504_v37 = vadd.f32 %v1503_v4, %v1421_v48 }
 0x3a2   : > { %v2288_v62 = vpop.f32.mrf.mxu1 }
 0x3a3   : > { %v1578_v0 = vadd.f32 %v2288_v62, %v1425_v40 }
 0x3a4   : > { %v1572_v18 = vpop.f32.mrf.mxu1 }
 0x3a5   : > { %v1573_v33 = vadd.f32 %v1572_v18, %v1425_v40 }
 0x3b8   : > { %v1712_v6 = vpop.f32.mrf.mxu0 }
 0x3b9   : > { %v1713_v25 = vadd.f32 %v1712_v6, %v1634_v22 }
 0x3ba   : > { %v1714_v47 = vpop.f32.mrf.mxu0 }
 0x3bb   : > { %v1798_v9 = vadd.f32 %v1713_v25, %v1496_v50  ;;  %v1715_v15 = vadd.f32 %v1714_v47, %v1638_v14 }
 0x3bc   : > { %v1718_v20 = vpop.f32.mrf.mxu0 }
 0x3bd   : > { %v1962_v13 = vmul.f32 -1.442695, %v1798_v9  ;;  %v1719_v42 = vadd.f32 %v1718_v20, %v1634_v22  ;;  %v1812_v11 = vadd.f32 %v1715_v15, %v1498_v32 }
 0x3be   : > { %v1720_v5 = vpop.f32.mrf.mxu0 }
 0x3bf   : > { %2514 = vpow2.f32 %v1962_v13  ;;  %v1799_v43 = vadd.f32 %v1719_v42, %v1502_v51  ;;  %v1721_v10 = vadd.f32 %v1720_v5, %v1638_v14  ;;  %v1964_v55 = vmul.f32 -1.442695, %v1812_v11 }
 0x3c1   : > { %v1963_v23 = vmul.f32 -1.442695, %v1799_v43  ;;  %v1813_v38 = vadd.f32 %v1721_v10, %v1504_v37 }
 0x3c3   : > { %2516 = vpow2.f32 %v1963_v23  ;;  %v1965_v41 = vmul.f32 -1.442695, %v1813_v38  ;;  %v2323_v30 = vpop.f32.mrf.mxu1 }
 0x3c4   : > { %2518 = vpow2.f32 %v1964_v55  ;;  %v1795_v56 = vadd.f32 %v2323_v30, %v1642_v57 }
 0x3c5   : > { %2520 = vpow2.f32 %v1965_v41  ;;  %v1789_v61 = vpop.f32.mrf.mxu1 }
 0x3c6   : > { %v1790_v59 = vadd.f32 %v1789_v61, %v1642_v57 }
 0x3cc   : > { %v2515_v60 = vpop.eup %2514 }
 0x3cd   : > { %v1806_v26 = vadd.f32 1.0, %v2515_v60 }
 0x3cf   : > { %2522 = vrcp.f32 %v1806_v26 }
 0x3d0   : > { %v2517_v31 = vpop.eup %2516 }
 0x3d1   : > { %v1807_v34 = vadd.f32 1.0, %v2517_v31  ;;  %v2519_v58 = vpop.eup %2518 }
 0x3d2   : > { %v2521_v12 = vpop.eup %2520  ;;  %v1820_v17 = vadd.f32 1.0, %v2519_v58 }
 0x3d3   : > { %2524 = vrcp.f32 %v1807_v34  ;;  %v1821_v24 = vadd.f32 1.0, %v2521_v12 }
 0x3d4   : > { %2526 = vrcp.f32 %v1820_v17 }
 0x3d5   : > { %2528 = vrcp.f32 %v1821_v24 }
 0x3dc   : > { %v2523_v16 = vpop.eup %2522 }
 0x3dd   : > { %v1826_v44 = vmul.f32 %v2523_v16, %v1790_v59 }
 0x3df   : > { %v1828_v29 = vadd.f32 %v1826_v44, %v1573_v33 }
 0x3e0   : > { %v2525_v28 = vpop.eup %2524 }
 0x3e1   : > { %v1827_v53 = vmul.f32 %v2525_v28, %v1795_v56  ;;  %2530 = vtanh.f32 %v1828_v29  ;;  %v2527_v1 = vpop.eup %2526 }
 0x3e2   : > { %v2529_v52 = vpop.eup %2528  ;;  %v1832_v54 = vsub.f32 1.0, %v2527_v1  ;;  %v1836_v2 = vmul.f32 %v2527_v1, %v3319_v3 }
 0x3e3   : > { %v1829_v63 = vadd.f32 %v1827_v53, %v1578_v0  ;;  %v1833_v19 = vsub.f32 1.0, %v2529_v52  ;;  %v1837_v7 = vmul.f32 %v2529_v52, %v3323_v39 }
 0x3e5   : > { %2532 = vtanh.f32 %v1829_v63 }
 0x3ee   : > { %v2531_v46 = vpop.eup %2530 }
 0x3ef   : > { %v1834_v21 = vmul.f32 %v2531_v46, %v1832_v54 }
 0x3f1   : > { %v1838_v27 = vadd.f32 %v1836_v2, %v1834_v21 }
 0x3f2   : > { %v2533_v8 = vpop.eup %2532 }
 0x3f3   : > { %v1835_v36 = vmul.f32 %v2533_v8, %v1833_v19  ;;  %1840 = vst [vmem:[#allocation14] sm:$0xff] %v1838_v27 }
 0x3f5   : > { %v1839_v45 = vadd.f32 %v1837_v7, %v1835_v36 }
 0x3f7   : > { %1841 = vst [vmem:[#allocation14 + $0x8] sm:$0xff] %v1839_v45 }
 0x3f8 PF: > { %p3338_p10 = scmp.eq.s32.totalorder %s1947_s24, 5  ;;  %s2746_s22 = smov [#allocation14]  }
 0x3f9   : > { %s1848_s23 = sshll.u32 %s2746_s22, 4  ;;  %s1849_s23 = int_to_ptr.vmem [resolvable:$true] %s1848_s23 }
 0x3fa   : > { %s2636_s18 = scalar_lea.vmem %s1849_s23, 256  ;;  %p2643_p5 = scmp.lt.s32.totalorder %s1849_s23, %s1849_s23 }
 0x3fb   : > { %p2637_p0 = scmp.ne.s32.totalorder %s1849_s23, %s2636_s18  ;;  %p2644_p6 = scmp.lt.s32.totalorder %s2636_s18, %s2636_s18 }
 0x3fd   : > { %p2638_p3 = pnand %p2637_p0, %p3338_p10  ;;  %p2645_p1 = por %p2644_p6, %p2643_p5 }
 0x3ff   : > { %p2639_p4 = pneg %p2638_p3 }
 0x401   : > { %p2646_p13 = pnand %p2645_p1, %p2639_p4 }
 0x403   : > { %2649 = shalt.err (!%p2646_p13)
}
 0x404   : > { %s2747_s28 = smov 128   ;;  %s2748_s24 = smov 8  }
 0x405   : > { %2369 = dma.vmem_to_hbm [thread:$0]  (%p3338_p10), %s1849_s23, 256, %s3376_s9, [#allocation10], %s2747_s28, %s2747_s28, %s2748_s24  }
 0x406   : > { %2699 = dma.done.wait (%p3338_p10), [#allocation10], 256  }
 0x407   : > { %2701 = vsyncadd (%p3338_p10), [#allocation10], 4294967040 }
 0x408 PF: > { %s32_s21 = sadd.s32 1, %s2720_s21   ;;  %s3406_s1 = smov %s2712_s19 }
 0x409   : > { %p29_p2 = scmp.ge.s32.totalorder %s32_s21, 8   ;;  %s3407_s18 = smov %s2716_s20 }
 0x40a   : > { %s3408_s19 = smov %s3411_s12  ;;  %s3409_s20 = smov %s3415_s13 }
 0x40b   :  { %31 = sbr.rel (!%p29_p2) target bundleno = 30 (0x1e), region = 140 }
 0x410   :  { %1864 = vsyncpa [#allocation9], 1 }
 0x411   :  { %1866 = vsyncpa [#allocation9 + $0x1], 1 }
 0x412   :  { %1867 = vsyncpa [#allocation12], 1 }
 0x413   :  { %1868 = vsyncpa [#allocation10], 1 }
 0x414   :  { %1870 = vsyncpa [#allocation10 + $0x1], 1 }

</bundles_post_ra>
